<compile_context>
chip_gen: v7x
topology: tpu7x:2x2x1
jax: 0.10.0
libtpu: 0.0.40
codegen_flags: <defaults>
</compile_context>

<pallas_src>
import jax
import jax.numpy as jnp
from jax.experimental import pallas as pl
from jax.experimental.pallas import tpu as pltpu

# Make the pure-JAX reference use full-precision f32 matmuls on TPU so it is
# comparable to the exact-f32 kernel (XLA's default is a 1-pass bf16 matmul).
jax.config.update("jax_default_matmul_precision", "highest")

# ---------------- model sizes (small, consistent with the module) -----------
B = 2          # batch
S = 8          # sequence length
D = 32         # d_model
H = 4          # num_heads
HD = D // H    # head_dim
FF = 64        # d_ff
EPS = 1e-5     # nn.LayerNorm default eps

BS = B * S

# ---------------- packed parameter slab layout -------------------------------
# Weight slab (W_ROWS, W_COLS), all sublane starts aligned to multiples of 8:
#   rows 0:D , cols [0        : 3D      )  -> [W_q | W_k | W_v]   (fused QKV)
#   rows 0:D , cols [3D       : 4D      )  -> W_o
#   rows 0:D , cols [4D       : 4D+FF   )  -> W_fc1
#   rows 0:FF, cols [4D+FF    : 4D+FF+D )  -> W_fc2
W_ROWS = max(D, FF)            # 64
W_COLS = 4 * D + FF + D        # 224
# Vector slab (8, 3D): one row per small vector.
#   row 0: [b_q | b_k | b_v]   row 1: b_o     row 2: b_fc1   row 3: b_fc2
#   row 4: gamma1              row 5: beta1   row 6: gamma2  row 7: beta2
VEC_ROWS = 8
VEC_COLS = 3 * D               # 96


def pack_encoder_params(params):
    """Build the two parameter slabs ONCE at init time (not per forward call)."""
    (wq, bq, wk, bk, wv, bv, wo, bo, w1, b1, w2, b2, g1, be1, g2, be2) = params

    w_slab = jnp.zeros((W_ROWS, W_COLS), jnp.float32)
    w_slab = w_slab.at[0:D, 0:3 * D].set(jnp.concatenate([wq, wk, wv], axis=1))
    w_slab = w_slab.at[0:D, 3 * D:4 * D].set(wo)
    w_slab = w_slab.at[0:D, 4 * D:4 * D + FF].set(w1)
    w_slab = w_slab.at[0:FF, 4 * D + FF:4 * D + FF + D].set(w2)

    vec_slab = jnp.zeros((VEC_ROWS, VEC_COLS), jnp.float32)
    vec_slab = vec_slab.at[0, 0:3 * D].set(jnp.concatenate([bq, bk, bv], axis=1)[0])
    vec_slab = vec_slab.at[1, 0:D].set(bo[0])
    vec_slab = vec_slab.at[2, 0:FF].set(b1[0])
    vec_slab = vec_slab.at[3, 0:D].set(b2[0])
    vec_slab = vec_slab.at[4, 0:D].set(g1[0])
    vec_slab = vec_slab.at[5, 0:D].set(be1[0])
    vec_slab = vec_slab.at[6, 0:D].set(g2[0])
    vec_slab = vec_slab.at[7, 0:D].set(be2[0])
    return w_slab, vec_slab


# ---------------- kernel ------------------------------------------------------
def encoder_layer_kernel(x_ref, w_ref, v_ref, out_ref):
    f32 = jnp.float32
    x = x_ref[...]                                         # (BS, D)

    # ---- unpack parameter slabs (static, sublane-aligned slices) -----------
    w_qkv = w_ref[0:D, 0:3 * D]                            # (D, 3D)
    w_o = w_ref[0:D, 3 * D:4 * D]                          # (D, D)
    w_1 = w_ref[0:D, 4 * D:4 * D + FF]                     # (D, FF)
    w_2 = w_ref[0:FF, 4 * D + FF:4 * D + FF + D]           # (FF, D)

    b_qkv = v_ref[0:1, 0:3 * D]                            # (1, 3D)
    b_o = v_ref[1:2, 0:D]
    b_1 = v_ref[2:3, 0:FF]
    b_2 = v_ref[3:4, 0:D]
    g1 = v_ref[4:5, 0:D]
    be1 = v_ref[5:6, 0:D]
    g2 = v_ref[6:7, 0:D]
    be2 = v_ref[7:8, 0:D]

    def layer_norm(t, g, b):
        # Two-pass variance, matching nn.LayerNorm / the reference exactly.
        mu = jnp.mean(t, axis=-1, keepdims=True)
        var = jnp.mean((t - mu) ** 2, axis=-1, keepdims=True)
        return (t - mu) * jax.lax.rsqrt(var + EPS) * g + b

    # ---- multi-head self-attention ------------------------------------------
    # Fused QKV projection: one (BS, D) @ (D, 3D) MXU matmul.
    qkv = jnp.dot(x, w_qkv, preferred_element_type=f32) + b_qkv      # (BS, 3D)

    scale = 1.0 / jnp.sqrt(jnp.float32(HD))
    attn = jnp.zeros((BS, D), dtype=f32)
    # TODO(synk): optional attention mask (mask=None path) is not implemented.
    for h in range(H):  # static unroll over heads; batched over B inside
        lo = h * HD
        qh = qkv[:, lo:lo + HD].reshape(B, S, HD)
        kh = qkv[:, D + lo:D + lo + HD].reshape(B, S, HD)
        vh = qkv[:, 2 * D + lo:2 * D + lo + HD].reshape(B, S, HD)

        s = jnp.einsum("bqd,bkd->bqk", qh, kh,
                       preferred_element_type=f32) * scale           # (B, S, S)
        s = s - jnp.max(s, axis=-1, keepdims=True)
        p = jnp.exp(s)
        p = p / jnp.sum(p, axis=-1, keepdims=True)                   # exact softmax
        ctx = jnp.einsum("bqk,bkd->bqd", p, vh,
                         preferred_element_type=f32)                 # (B, S, HD)

        # Fold the head back in through the matching rows of W_o
        # (== concat(heads) @ W_o, without the lane-concat).
        attn = attn + jnp.dot(ctx.reshape(BS, HD), w_o[lo:lo + HD, :],
                              preferred_element_type=f32)
    attn = attn + b_o

    # ---- residual + layernorm 1 ---------------------------------------------
    x1 = layer_norm(x + attn, g1, be1)

    # ---- position-wise feed-forward ------------------------------------------
    h1 = jnp.maximum(jnp.dot(x1, w_1, preferred_element_type=f32) + b_1, 0.0)
    ffn = jnp.dot(h1, w_2, preferred_element_type=f32) + b_2

    # ---- residual + layernorm 2 ----------------------------------------------
    x2 = layer_norm(x1 + ffn, g2, be2)

    out_ref[...] = x2.astype(out_ref.dtype)


# ---------------- wrapper -----------------------------------------------------
@jax.jit
def encoder_layer(x, w_slab, vec_slab):
    """Forward pass. `w_slab`/`vec_slab` come from pack_encoder_params (init time)."""
    x2d = x.reshape(BS, D)   # collapse batch: whole problem in one invocation
    vmem = pltpu.MemorySpace.VMEM
    out = pl.pallas_call(
        encoder_layer_kernel,
        out_shape=jax.ShapeDtypeStruct((BS, D), jnp.float32),
        in_specs=[
            pl.BlockSpec(memory_space=vmem),   # x        (BS, D)
            pl.BlockSpec(memory_space=vmem),   # w_slab   (W_ROWS, W_COLS)
            pl.BlockSpec(memory_space=vmem),   # vec_slab (8, 3D)
        ],
        out_specs=pl.BlockSpec(memory_space=vmem),
    )(x2d, w_slab, vec_slab)
    return out.reshape(B, S, D)


# ---------------- pure-JAX reference (for correctness check) ----------------
def reference(x, params):
    (wq, bq, wk, bk, wv, bv, wo, bo, w1, b1, w2, b2, g1, be1, g2, be2) = params

    def ln(t, g, be):
        mu = jnp.mean(t, -1, keepdims=True)
        var = jnp.mean((t - mu) ** 2, -1, keepdims=True)
        return (t - mu) / jnp.sqrt(var + EPS) * g + be

    q = x @ wq + bq
    k = x @ wk + bk
    v = x @ wv + bv
    split = lambda t: t.reshape(B, S, H, HD).transpose(0, 2, 1, 3)
    Q, K, V = split(q), split(k), split(v)
    scores = jnp.einsum("bhqd,bhkd->bhqk", Q, K) / jnp.sqrt(jnp.float32(HD))
    attn = jax.nn.softmax(scores, axis=-1)
    ctx = jnp.einsum("bhqk,bhkd->bhqd", attn, V).transpose(0, 2, 1, 3).reshape(B, S, D)
    attn_out = ctx @ wo + bo
    x1 = ln(x + attn_out, g1, be1)
    ffn = jnp.maximum(x1 @ w1 + b1, 0.0) @ w2 + b2
    return ln(x1 + ffn, g2, be2)


if __name__ == "__main__":
    key = jax.random.PRNGKey(0)
    ks = jax.random.split(key, 16)

    def lin(kw, shape, fan_in):
        return jax.random.normal(kw, shape, jnp.float32) * (1.0 / jnp.sqrt(fan_in))

    x = jax.random.normal(ks[0], (B, S, D), jnp.float32)

    params = (
        lin(ks[1], (D, D), D), lin(ks[2], (1, D), D),       # W_q, b_q
        lin(ks[3], (D, D), D), lin(ks[4], (1, D), D),       # W_k, b_k
        lin(ks[5], (D, D), D), lin(ks[6], (1, D), D),       # W_v, b_v
        lin(ks[7], (D, D), D), lin(ks[8], (1, D), D),       # W_o, b_o
        lin(ks[9], (D, FF), D), lin(ks[10], (1, FF), D),    # fc1
        lin(ks[11], (FF, D), FF), lin(ks[12], (1, D), FF),  # fc2
        jnp.ones((1, D), jnp.float32), jnp.zeros((1, D), jnp.float32),  # norm1
        jnp.ones((1, D), jnp.float32), jnp.zeros((1, D), jnp.float32),  # norm2
    )

    # Parameter packing happens ONCE at init time (hoisted out of the call path).
    w_slab, vec_slab = pack_encoder_params(params)
    w_slab = jax.block_until_ready(w_slab)
    vec_slab = jax.block_until_ready(vec_slab)

    out = jax.block_until_ready(encoder_layer(x, w_slab, vec_slab))
    ref = jax.block_until_ready(reference(x, params))

    assert out.shape == (B, S, D)
    assert jnp.allclose(out, ref, atol=2e-3, rtol=2e-3), (
        "mismatch vs reference: max abs diff = %g" % float(jnp.max(jnp.abs(out - ref))))
    print("KERNEL_OK")
</pallas_src>

<mosaic_0001>
module attributes {stable_mosaic.version = 11 : i64} {
  func.func @encoder_layer_kernel(%arg0: memref<16x32xf32, #tpu.memory_space<vmem>>, %arg1: memref<64x224xf32, #tpu.memory_space<vmem>>, %arg2: memref<8x96xf32, #tpu.memory_space<vmem>>, %arg3: memref<16x32xf32, #tpu.memory_space<vmem>>) attributes {dimension_semantics = [], scalar_prefetch = 0 : i64, scratch_operands = 0 : i64, tpu.core_type = #tpu.core_type<tc>} {
    %c0 = arith.constant 0 : index
    %c0_0 = arith.constant 0 : index
    %0 = vector.load %arg0[%c0, %c0_0] : memref<16x32xf32, #tpu.memory_space<vmem>>, vector<16x32xf32>
    %c0_1 = arith.constant 0 : index
    %c0_2 = arith.constant 0 : index
    %1 = vector.load %arg1[%c0_1, %c0_2] : memref<64x224xf32, #tpu.memory_space<vmem>>, vector<32x96xf32>
    %c0_3 = arith.constant 0 : index
    %c96 = arith.constant 96 : index
    %2 = vector.load %arg1[%c0_3, %c96] : memref<64x224xf32, #tpu.memory_space<vmem>>, vector<32x32xf32>
    %c0_4 = arith.constant 0 : index
    %c128 = arith.constant 128 : index
    %3 = vector.load %arg1[%c0_4, %c128] : memref<64x224xf32, #tpu.memory_space<vmem>>, vector<32x64xf32>
    %c0_5 = arith.constant 0 : index
    %c192 = arith.constant 192 : index
    %4 = vector.load %arg1[%c0_5, %c192] : memref<64x224xf32, #tpu.memory_space<vmem>>, vector<64x32xf32>
    %c0_6 = arith.constant 0 : index
    %c0_7 = arith.constant 0 : index
    %5 = vector.load %arg2[%c0_6, %c0_7] : memref<8x96xf32, #tpu.memory_space<vmem>>, vector<1x96xf32>
    %c1 = arith.constant 1 : index
    %c0_8 = arith.constant 0 : index
    %6 = vector.load %arg2[%c1, %c0_8] : memref<8x96xf32, #tpu.memory_space<vmem>>, vector<1x32xf32>
    %c2 = arith.constant 2 : index
    %c0_9 = arith.constant 0 : index
    %7 = vector.load %arg2[%c2, %c0_9] : memref<8x96xf32, #tpu.memory_space<vmem>>, vector<1x64xf32>
    %c3 = arith.constant 3 : index
    %c0_10 = arith.constant 0 : index
    %8 = vector.load %arg2[%c3, %c0_10] : memref<8x96xf32, #tpu.memory_space<vmem>>, vector<1x32xf32>
    %c4 = arith.constant 4 : index
    %c0_11 = arith.constant 0 : index
    %9 = vector.load %arg2[%c4, %c0_11] : memref<8x96xf32, #tpu.memory_space<vmem>>, vector<1x32xf32>
    %c5 = arith.constant 5 : index
    %c0_12 = arith.constant 0 : index
    %10 = vector.load %arg2[%c5, %c0_12] : memref<8x96xf32, #tpu.memory_space<vmem>>, vector<1x32xf32>
    %c6 = arith.constant 6 : index
    %c0_13 = arith.constant 0 : index
    %11 = vector.load %arg2[%c6, %c0_13] : memref<8x96xf32, #tpu.memory_space<vmem>>, vector<1x32xf32>
    %c7 = arith.constant 7 : index
    %c0_14 = arith.constant 0 : index
    %12 = vector.load %arg2[%c7, %c0_14] : memref<8x96xf32, #tpu.memory_space<vmem>>, vector<1x32xf32>
    %cst = arith.constant dense<0.000000e+00> : vector<16x96xf32>
    %13 = tpu.matmul %0, %1, %cst {dimension_numbers = #tpu.dot_dimension_numbers<[1], [0], [0], [1], [0, 0, 1, 1], [], []>, precision = #tpu.contract_precision<fp32>} : vector<16x32xf32>, vector<32x96xf32>, vector<16x96xf32> -> vector<16x96xf32>
    %14 = vector.broadcast %5 : vector<1x96xf32> to vector<16x96xf32>
    %15 = arith.addf %13, %14 : vector<16x96xf32>
    %cst_15 = arith.constant 8.000000e+00 : f32
    %16 = math.sqrt %cst_15 : f32
    %cst_16 = arith.constant 1.000000e+00 : f32
    %17 = arith.divf %cst_16, %16 : f32
    %cst_17 = arith.constant 0.000000e+00 : f32
    %18 = vector.broadcast %cst_17 : f32 to vector<16x32xf32>
    %19 = vector.extract_strided_slice %15 {offsets = [0, 0], sizes = [16, 8], strides = [1, 1]} : vector<16x96xf32> to vector<16x8xf32>
    %20 = vector.shape_cast %19 : vector<16x8xf32> to vector<2x8x8xf32>
    %21 = vector.extract_strided_slice %15 {offsets = [0, 32], sizes = [16, 8], strides = [1, 1]} : vector<16x96xf32> to vector<16x8xf32>
    %22 = vector.shape_cast %21 : vector<16x8xf32> to vector<2x8x8xf32>
    %23 = vector.extract_strided_slice %15 {offsets = [0, 64], sizes = [16, 8], strides = [1, 1]} : vector<16x96xf32> to vector<16x8xf32>
    %24 = vector.shape_cast %23 : vector<16x8xf32> to vector<2x8x8xf32>
    "tpu.trace_start"() <{level = 10 : i32, message = "bqd,bkd->bqk"}> : () -> ()
    %cst_18 = arith.constant dense<0.000000e+00> : vector<2x8x8xf32>
    %25 = tpu.matmul %20, %22, %cst_18 {dimension_numbers = #tpu.dot_dimension_numbers<[2], [2], [1], [1], [0, 0, 0, 1, 1, 1], [0], [0]>, precision = #tpu.contract_precision<fp32>} : vector<2x8x8xf32>, vector<2x8x8xf32>, vector<2x8x8xf32> -> vector<2x8x8xf32>
    "tpu.trace_stop"() : () -> ()
    %26 = vector.broadcast %17 : f32 to vector<2x8x8xf32>
    %27 = arith.mulf %25, %26 : vector<2x8x8xf32>
    %cst_19 = arith.constant dense<0xFF800000> : vector<2x8xf32>
    %28 = vector.multi_reduction <maximumf>, %27, %cst_19 [2] : vector<2x8x8xf32> to vector<2x8xf32>
    %29 = vector.shape_cast %28 : vector<2x8xf32> to vector<2x8x1xf32>
    %30 = vector.broadcast %29 : vector<2x8x1xf32> to vector<2x8x8xf32>
    %31 = arith.subf %27, %30 : vector<2x8x8xf32>
    %32 = math.exp %31 : vector<2x8x8xf32>
    %cst_20 = arith.constant dense<0.000000e+00> : vector<2x8xf32>
    %33 = vector.multi_reduction <add>, %32, %cst_20 [2] : vector<2x8x8xf32> to vector<2x8xf32>
    %34 = vector.shape_cast %33 : vector<2x8xf32> to vector<2x8x1xf32>
    %35 = vector.broadcast %34 : vector<2x8x1xf32> to vector<2x8x8xf32>
    %36 = arith.divf %32, %35 : vector<2x8x8xf32>
    "tpu.trace_start"() <{level = 10 : i32, message = "bqk,bkd->bqd"}> : () -> ()
    %cst_21 = arith.constant dense<0.000000e+00> : vector<2x8x8xf32>
    %37 = tpu.matmul %36, %24, %cst_21 {dimension_numbers = #tpu.dot_dimension_numbers<[2], [1], [1], [2], [0, 0, 0, 1, 1, 2], [0], [0]>, precision = #tpu.contract_precision<fp32>} : vector<2x8x8xf32>, vector<2x8x8xf32>, vector<2x8x8xf32> -> vector<2x8x8xf32>
    "tpu.trace_stop"() : () -> ()
    %38 = vector.shape_cast %37 : vector<2x8x8xf32> to vector<16x8xf32>
    %39 = vector.extract_strided_slice %2 {offsets = [0, 0], sizes = [8, 32], strides = [1, 1]} : vector<32x32xf32> to vector<8x32xf32>
    %cst_22 = arith.constant dense<0.000000e+00> : vector<16x32xf32>
    %40 = tpu.matmul %38, %39, %cst_22 {dimension_numbers = #tpu.dot_dimension_numbers<[1], [0], [0], [1], [0, 0, 1, 1], [], []>, precision = #tpu.contract_precision<fp32>} : vector<16x8xf32>, vector<8x32xf32>, vector<16x32xf32> -> vector<16x32xf32>
    %41 = arith.addf %18, %40 : vector<16x32xf32>
    %42 = vector.extract_strided_slice %15 {offsets = [0, 8], sizes = [16, 8], strides = [1, 1]} : vector<16x96xf32> to vector<16x8xf32>
    %43 = vector.shape_cast %42 : vector<16x8xf32> to vector<2x8x8xf32>
    %44 = vector.extract_strided_slice %15 {offsets = [0, 40], sizes = [16, 8], strides = [1, 1]} : vector<16x96xf32> to vector<16x8xf32>
    %45 = vector.shape_cast %44 : vector<16x8xf32> to vector<2x8x8xf32>
    %46 = vector.extract_strided_slice %15 {offsets = [0, 72], sizes = [16, 8], strides = [1, 1]} : vector<16x96xf32> to vector<16x8xf32>
    %47 = vector.shape_cast %46 : vector<16x8xf32> to vector<2x8x8xf32>
    "tpu.trace_start"() <{level = 10 : i32, message = "bqd,bkd->bqk"}> : () -> ()
    %cst_23 = arith.constant dense<0.000000e+00> : vector<2x8x8xf32>
    %48 = tpu.matmul %43, %45, %cst_23 {dimension_numbers = #tpu.dot_dimension_numbers<[2], [2], [1], [1], [0, 0, 0, 1, 1, 1], [0], [0]>, precision = #tpu.contract_precision<fp32>} : vector<2x8x8xf32>, vector<2x8x8xf32>, vector<2x8x8xf32> -> vector<2x8x8xf32>
    "tpu.trace_stop"() : () -> ()
    %49 = vector.broadcast %17 : f32 to vector<2x8x8xf32>
    %50 = arith.mulf %48, %49 : vector<2x8x8xf32>
    %cst_24 = arith.constant dense<0xFF800000> : vector<2x8xf32>
    %51 = vector.multi_reduction <maximumf>, %50, %cst_24 [2] : vector<2x8x8xf32> to vector<2x8xf32>
    %52 = vector.shape_cast %51 : vector<2x8xf32> to vector<2x8x1xf32>
    %53 = vector.broadcast %52 : vector<2x8x1xf32> to vector<2x8x8xf32>
    %54 = arith.subf %50, %53 : vector<2x8x8xf32>
    %55 = math.exp %54 : vector<2x8x8xf32>
    %cst_25 = arith.constant dense<0.000000e+00> : vector<2x8xf32>
    %56 = vector.multi_reduction <add>, %55, %cst_25 [2] : vector<2x8x8xf32> to vector<2x8xf32>
    %57 = vector.shape_cast %56 : vector<2x8xf32> to vector<2x8x1xf32>
    %58 = vector.broadcast %57 : vector<2x8x1xf32> to vector<2x8x8xf32>
    %59 = arith.divf %55, %58 : vector<2x8x8xf32>
    "tpu.trace_start"() <{level = 10 : i32, message = "bqk,bkd->bqd"}> : () -> ()
    %cst_26 = arith.constant dense<0.000000e+00> : vector<2x8x8xf32>
    %60 = tpu.matmul %59, %47, %cst_26 {dimension_numbers = #tpu.dot_dimension_numbers<[2], [1], [1], [2], [0, 0, 0, 1, 1, 2], [0], [0]>, precision = #tpu.contract_precision<fp32>} : vector<2x8x8xf32>, vector<2x8x8xf32>, vector<2x8x8xf32> -> vector<2x8x8xf32>
    "tpu.trace_stop"() : () -> ()
    %61 = vector.shape_cast %60 : vector<2x8x8xf32> to vector<16x8xf32>
    %62 = vector.extract_strided_slice %2 {offsets = [8, 0], sizes = [8, 32], strides = [1, 1]} : vector<32x32xf32> to vector<8x32xf32>
    %cst_27 = arith.constant dense<0.000000e+00> : vector<16x32xf32>
    %63 = tpu.matmul %61, %62, %cst_27 {dimension_numbers = #tpu.dot_dimension_numbers<[1], [0], [0], [1], [0, 0, 1, 1], [], []>, precision = #tpu.contract_precision<fp32>} : vector<16x8xf32>, vector<8x32xf32>, vector<16x32xf32> -> vector<16x32xf32>
    %64 = arith.addf %41, %63 : vector<16x32xf32>
    %65 = vector.extract_strided_slice %15 {offsets = [0, 16], sizes = [16, 8], strides = [1, 1]} : vector<16x96xf32> to vector<16x8xf32>
    %66 = vector.shape_cast %65 : vector<16x8xf32> to vector<2x8x8xf32>
    %67 = vector.extract_strided_slice %15 {offsets = [0, 48], sizes = [16, 8], strides = [1, 1]} : vector<16x96xf32> to vector<16x8xf32>
    %68 = vector.shape_cast %67 : vector<16x8xf32> to vector<2x8x8xf32>
    %69 = vector.extract_strided_slice %15 {offsets = [0, 80], sizes = [16, 8], strides = [1, 1]} : vector<16x96xf32> to vector<16x8xf32>
    %70 = vector.shape_cast %69 : vector<16x8xf32> to vector<2x8x8xf32>
    "tpu.trace_start"() <{level = 10 : i32, message = "bqd,bkd->bqk"}> : () -> ()
    %cst_28 = arith.constant dense<0.000000e+00> : vector<2x8x8xf32>
    %71 = tpu.matmul %66, %68, %cst_28 {dimension_numbers = #tpu.dot_dimension_numbers<[2], [2], [1], [1], [0, 0, 0, 1, 1, 1], [0], [0]>, precision = #tpu.contract_precision<fp32>} : vector<2x8x8xf32>, vector<2x8x8xf32>, vector<2x8x8xf32> -> vector<2x8x8xf32>
    "tpu.trace_stop"() : () -> ()
    %72 = vector.broadcast %17 : f32 to vector<2x8x8xf32>
    %73 = arith.mulf %71, %72 : vector<2x8x8xf32>
    %cst_29 = arith.constant dense<0xFF800000> : vector<2x8xf32>
    %74 = vector.multi_reduction <maximumf>, %73, %cst_29 [2] : vector<2x8x8xf32> to vector<2x8xf32>
    %75 = vector.shape_cast %74 : vector<2x8xf32> to vector<2x8x1xf32>
    %76 = vector.broadcast %75 : vector<2x8x1xf32> to vector<2x8x8xf32>
    %77 = arith.subf %73, %76 : vector<2x8x8xf32>
    %78 = math.exp %77 : vector<2x8x8xf32>
    %cst_30 = arith.constant dense<0.000000e+00> : vector<2x8xf32>
    %79 = vector.multi_reduction <add>, %78, %cst_30 [2] : vector<2x8x8xf32> to vector<2x8xf32>
    %80 = vector.shape_cast %79 : vector<2x8xf32> to vector<2x8x1xf32>
    %81 = vector.broadcast %80 : vector<2x8x1xf32> to vector<2x8x8xf32>
    %82 = arith.divf %78, %81 : vector<2x8x8xf32>
    "tpu.trace_start"() <{level = 10 : i32, message = "bqk,bkd->bqd"}> : () -> ()
    %cst_31 = arith.constant dense<0.000000e+00> : vector<2x8x8xf32>
    %83 = tpu.matmul %82, %70, %cst_31 {dimension_numbers = #tpu.dot_dimension_numbers<[2], [1], [1], [2], [0, 0, 0, 1, 1, 2], [0], [0]>, precision = #tpu.contract_precision<fp32>} : vector<2x8x8xf32>, vector<2x8x8xf32>, vector<2x8x8xf32> -> vector<2x8x8xf32>
    "tpu.trace_stop"() : () -> ()
    %84 = vector.shape_cast %83 : vector<2x8x8xf32> to vector<16x8xf32>
    %85 = vector.extract_strided_slice %2 {offsets = [16, 0], sizes = [8, 32], strides = [1, 1]} : vector<32x32xf32> to vector<8x32xf32>
    %cst_32 = arith.constant dense<0.000000e+00> : vector<16x32xf32>
    %86 = tpu.matmul %84, %85, %cst_32 {dimension_numbers = #tpu.dot_dimension_numbers<[1], [0], [0], [1], [0, 0, 1, 1], [], []>, precision = #tpu.contract_precision<fp32>} : vector<16x8xf32>, vector<8x32xf32>, vector<16x32xf32> -> vector<16x32xf32>
    %87 = arith.addf %64, %86 : vector<16x32xf32>
    %88 = vector.extract_strided_slice %15 {offsets = [0, 24], sizes = [16, 8], strides = [1, 1]} : vector<16x96xf32> to vector<16x8xf32>
    %89 = vector.shape_cast %88 : vector<16x8xf32> to vector<2x8x8xf32>
    %90 = vector.extract_strided_slice %15 {offsets = [0, 56], sizes = [16, 8], strides = [1, 1]} : vector<16x96xf32> to vector<16x8xf32>
    %91 = vector.shape_cast %90 : vector<16x8xf32> to vector<2x8x8xf32>
    %92 = vector.extract_strided_slice %15 {offsets = [0, 88], sizes = [16, 8], strides = [1, 1]} : vector<16x96xf32> to vector<16x8xf32>
    %93 = vector.shape_cast %92 : vector<16x8xf32> to vector<2x8x8xf32>
    "tpu.trace_start"() <{level = 10 : i32, message = "bqd,bkd->bqk"}> : () -> ()
    %cst_33 = arith.constant dense<0.000000e+00> : vector<2x8x8xf32>
    %94 = tpu.matmul %89, %91, %cst_33 {dimension_numbers = #tpu.dot_dimension_numbers<[2], [2], [1], [1], [0, 0, 0, 1, 1, 1], [0], [0]>, precision = #tpu.contract_precision<fp32>} : vector<2x8x8xf32>, vector<2x8x8xf32>, vector<2x8x8xf32> -> vector<2x8x8xf32>
    "tpu.trace_stop"() : () -> ()
    %95 = vector.broadcast %17 : f32 to vector<2x8x8xf32>
    %96 = arith.mulf %94, %95 : vector<2x8x8xf32>
    %cst_34 = arith.constant dense<0xFF800000> : vector<2x8xf32>
    %97 = vector.multi_reduction <maximumf>, %96, %cst_34 [2] : vector<2x8x8xf32> to vector<2x8xf32>
    %98 = vector.shape_cast %97 : vector<2x8xf32> to vector<2x8x1xf32>
    %99 = vector.broadcast %98 : vector<2x8x1xf32> to vector<2x8x8xf32>
    %100 = arith.subf %96, %99 : vector<2x8x8xf32>
    %101 = math.exp %100 : vector<2x8x8xf32>
    %cst_35 = arith.constant dense<0.000000e+00> : vector<2x8xf32>
    %102 = vector.multi_reduction <add>, %101, %cst_35 [2] : vector<2x8x8xf32> to vector<2x8xf32>
    %103 = vector.shape_cast %102 : vector<2x8xf32> to vector<2x8x1xf32>
    %104 = vector.broadcast %103 : vector<2x8x1xf32> to vector<2x8x8xf32>
    %105 = arith.divf %101, %104 : vector<2x8x8xf32>
    "tpu.trace_start"() <{level = 10 : i32, message = "bqk,bkd->bqd"}> : () -> ()
    %cst_36 = arith.constant dense<0.000000e+00> : vector<2x8x8xf32>
    %106 = tpu.matmul %105, %93, %cst_36 {dimension_numbers = #tpu.dot_dimension_numbers<[2], [1], [1], [2], [0, 0, 0, 1, 1, 2], [0], [0]>, precision = #tpu.contract_precision<fp32>} : vector<2x8x8xf32>, vector<2x8x8xf32>, vector<2x8x8xf32> -> vector<2x8x8xf32>
    "tpu.trace_stop"() : () -> ()
    %107 = vector.shape_cast %106 : vector<2x8x8xf32> to vector<16x8xf32>
    %108 = vector.extract_strided_slice %2 {offsets = [24, 0], sizes = [8, 32], strides = [1, 1]} : vector<32x32xf32> to vector<8x32xf32>
    %cst_37 = arith.constant dense<0.000000e+00> : vector<16x32xf32>
    %109 = tpu.matmul %107, %108, %cst_37 {dimension_numbers = #tpu.dot_dimension_numbers<[1], [0], [0], [1], [0, 0, 1, 1], [], []>, precision = #tpu.contract_precision<fp32>} : vector<16x8xf32>, vector<8x32xf32>, vector<16x32xf32> -> vector<16x32xf32>
    %110 = arith.addf %87, %109 : vector<16x32xf32>
    %111 = vector.broadcast %6 : vector<1x32xf32> to vector<16x32xf32>
    %112 = arith.addf %110, %111 : vector<16x32xf32>
    %113 = arith.addf %0, %112 : vector<16x32xf32>
    %cst_38 = arith.constant dense<0.000000e+00> : vector<16xf32>
    %114 = vector.multi_reduction <add>, %113, %cst_38 [1] : vector<16x32xf32> to vector<16xf32>
    %115 = vector.shape_cast %114 : vector<16xf32> to vector<16x1xf32>
    %cst_39 = arith.constant 3.200000e+01 : f32
    %116 = vector.broadcast %cst_39 : f32 to vector<16x1xf32>
    %117 = arith.divf %115, %116 : vector<16x1xf32>
    %118 = vector.broadcast %117 : vector<16x1xf32> to vector<16x32xf32>
    %119 = arith.subf %113, %118 : vector<16x32xf32>
    %120 = arith.mulf %119, %119 : vector<16x32xf32>
    %cst_40 = arith.constant dense<0.000000e+00> : vector<16xf32>
    %121 = vector.multi_reduction <add>, %120, %cst_40 [1] : vector<16x32xf32> to vector<16xf32>
    %122 = vector.shape_cast %121 : vector<16xf32> to vector<16x1xf32>
    %cst_41 = arith.constant 3.200000e+01 : f32
    %123 = vector.broadcast %cst_41 : f32 to vector<16x1xf32>
    %124 = arith.divf %122, %123 : vector<16x1xf32>
    %125 = vector.broadcast %117 : vector<16x1xf32> to vector<16x32xf32>
    %126 = arith.subf %113, %125 : vector<16x32xf32>
    %cst_42 = arith.constant 9.99999974E-6 : f32
    %127 = vector.broadcast %cst_42 : f32 to vector<16x1xf32>
    %128 = arith.addf %124, %127 : vector<16x1xf32>
    %129 = math.rsqrt %128 : vector<16x1xf32>
    %130 = vector.broadcast %129 : vector<16x1xf32> to vector<16x32xf32>
    %131 = arith.mulf %126, %130 : vector<16x32xf32>
    %132 = vector.broadcast %9 : vector<1x32xf32> to vector<16x32xf32>
    %133 = arith.mulf %131, %132 : vector<16x32xf32>
    %134 = vector.broadcast %10 : vector<1x32xf32> to vector<16x32xf32>
    %135 = arith.addf %133, %134 : vector<16x32xf32>
    %cst_43 = arith.constant dense<0.000000e+00> : vector<16x64xf32>
    %136 = tpu.matmul %135, %3, %cst_43 {dimension_numbers = #tpu.dot_dimension_numbers<[1], [0], [0], [1], [0, 0, 1, 1], [], []>, precision = #tpu.contract_precision<fp32>} : vector<16x32xf32>, vector<32x64xf32>, vector<16x64xf32> -> vector<16x64xf32>
    %137 = vector.broadcast %7 : vector<1x64xf32> to vector<16x64xf32>
    %138 = arith.addf %136, %137 : vector<16x64xf32>
    %cst_44 = arith.constant 0.000000e+00 : f32
    %139 = vector.broadcast %cst_44 : f32 to vector<16x64xf32>
    %140 = arith.maximumf %138, %139 : vector<16x64xf32>
    %cst_45 = arith.constant dense<0.000000e+00> : vector<16x32xf32>
    %141 = tpu.matmul %140, %4, %cst_45 {dimension_numbers = #tpu.dot_dimension_numbers<[1], [0], [0], [1], [0, 0, 1, 1], [], []>, precision = #tpu.contract_precision<fp32>} : vector<16x64xf32>, vector<64x32xf32>, vector<16x32xf32> -> vector<16x32xf32>
    %142 = vector.broadcast %8 : vector<1x32xf32> to vector<16x32xf32>
    %143 = arith.addf %141, %142 : vector<16x32xf32>
    %144 = arith.addf %135, %143 : vector<16x32xf32>
    %cst_46 = arith.constant dense<0.000000e+00> : vector<16xf32>
    %145 = vector.multi_reduction <add>, %144, %cst_46 [1] : vector<16x32xf32> to vector<16xf32>
    %146 = vector.shape_cast %145 : vector<16xf32> to vector<16x1xf32>
    %cst_47 = arith.constant 3.200000e+01 : f32
    %147 = vector.broadcast %cst_47 : f32 to vector<16x1xf32>
    %148 = arith.divf %146, %147 : vector<16x1xf32>
    %149 = vector.broadcast %148 : vector<16x1xf32> to vector<16x32xf32>
    %150 = arith.subf %144, %149 : vector<16x32xf32>
    %151 = arith.mulf %150, %150 : vector<16x32xf32>
    %cst_48 = arith.constant dense<0.000000e+00> : vector<16xf32>
    %152 = vector.multi_reduction <add>, %151, %cst_48 [1] : vector<16x32xf32> to vector<16xf32>
    %153 = vector.shape_cast %152 : vector<16xf32> to vector<16x1xf32>
    %cst_49 = arith.constant 3.200000e+01 : f32
    %154 = vector.broadcast %cst_49 : f32 to vector<16x1xf32>
    %155 = arith.divf %153, %154 : vector<16x1xf32>
    %156 = vector.broadcast %148 : vector<16x1xf32> to vector<16x32xf32>
    %157 = arith.subf %144, %156 : vector<16x32xf32>
    %cst_50 = arith.constant 9.99999974E-6 : f32
    %158 = vector.broadcast %cst_50 : f32 to vector<16x1xf32>
    %159 = arith.addf %155, %158 : vector<16x1xf32>
    %160 = math.rsqrt %159 : vector<16x1xf32>
    %161 = vector.broadcast %160 : vector<16x1xf32> to vector<16x32xf32>
    %162 = arith.mulf %157, %161 : vector<16x32xf32>
    %163 = vector.broadcast %11 : vector<1x32xf32> to vector<16x32xf32>
    %164 = arith.mulf %162, %163 : vector<16x32xf32>
    %165 = vector.broadcast %12 : vector<1x32xf32> to vector<16x32xf32>
    %166 = arith.addf %164, %165 : vector<16x32xf32>
    %c0_51 = arith.constant 0 : index
    %c0_52 = arith.constant 0 : index
    %167 = vector.load %arg3[%c0_51, %c0_52] : memref<16x32xf32, #tpu.memory_space<vmem>>, vector<16x32xf32>
    tpu.vector_store %arg3[%c0_51, %c0_52], %166 {strides = array<i32>} : memref<16x32xf32, #tpu.memory_space<vmem>>, vector<16x32xf32>,
    return
  }
}

</mosaic_0001>

<bundles_post_ra>
// kernel: encoder_layer.1
= control target key start
LH: loop header
LB: loop body
LE: loop exit
PB: predicated region body
PF: predicated region fallthrough
CT: control target
= control target key end

     0   :  { %8 = vsyncpa [#allocation3], 0  ;;  %s13799_s0 = inlined_call_operand.hbm [shape: f32[16,32], index: 0, kind: input, shape index: {}]   ;;  %s13800_s1 = inlined_call_operand.hbm [shape: f32[64,224], index: 1, kind: input, shape index: {}]   ;;  %s13801_s2 = inlined_call_operand.vmem [shape: f32[8,96], index: 2, kind: input, shape index: {}]   ;;  %s13802_s3 = inlined_call_operand.hbm [shape: f32[16,32], index: 3, kind: output, shape index: {}]  }
   0x1   :  { %9 = vsyncpa [#allocation6], 0 }
   0x2   :  { %10 = vsyncpa [#allocation4], 0  ;;  %s13039_s12 = smov [#allocation2]   ;;  %s12967_s16 = scalar_lea.hbm %s13799_s0, 256 }
   0x3   :  { %s16_s13 = sshll.u32 %s13039_s12, 4  ;;  %p12968_p0 = scmp.ne.s32.totalorder %s13799_s0, %s12967_s16  ;;  %s17_s13 = int_to_ptr.vmem [resolvable:$true] %s16_s13 }
   0x4   :  { %p12971_p1 = scmp.lt.u32.totalorder %s12967_s16, %s13799_s0 }
   0x6   :  { %p12973_p2 = pnand %p12971_p1, %p12968_p0 }
   0x8   :  { %12976 = shalt.err (!%p12973_p2)
}
   0x9   :  { %s12977_s21 = scalar_lea.vmem %s17_s13, 256  ;;  %p12982_p4 = scmp.lt.s32.totalorder %s17_s13, %s17_s13 }
   0xa   :  { %p12978_p3 = scmp.ne.s32.totalorder %s17_s13, %s12977_s21  ;;  %p12983_p5 = scmp.lt.s32.totalorder %s12977_s21, %s12977_s21 }
   0xc   :  { %p12984_p6 = por %p12983_p5, %p12982_p4 }
   0xe   :  { %p12985_p7 = pnand %p12984_p6, %p12978_p3 }
  0x10   :  { %12988 = shalt.err (!%p12985_p7)
}
  0x11   :  { %s13040_s22 = smov 128   ;;  %s13041_s23 = smov 8  }
  0x12   :  { %22 = dma.hbm_to_vmem [thread:$0]  %s13799_s0, 256, %s17_s13, [#allocation3], %s13040_s22, %s13040_s22, %s13041_s23  }
  0x13   :  { %s13042_s26 = smov [#allocation5]   ;;  %s12989_s30 = scalar_lea.hbm %s13800_s1, 2048 }
  0x14   :  { %s28_s27 = sshll.u32 %s13042_s26, 4  ;;  %p12990_p8 = scmp.ne.s32.totalorder %s13800_s1, %s12989_s30  ;;  %s29_s27 = int_to_ptr.vmem [resolvable:$true] %s28_s27 }
  0x15   :  { %p12993_p9 = scmp.lt.u32.totalorder %s12989_s30, %s13800_s1 }
  0x17   :  { %p12995_p10 = pnand %p12993_p9, %p12990_p8 }
  0x19   :  { %12998 = shalt.err (!%p12995_p10)
}
  0x1a   :  { %s12999_s8 = scalar_lea.vmem %s29_s27, 2048  ;;  %p13004_p12 = scmp.lt.s32.totalorder %s29_s27, %s29_s27 }
  0x1b   :  { %p13000_p11 = scmp.ne.s32.totalorder %s29_s27, %s12999_s8  ;;  %p13005_p13 = scmp.lt.s32.totalorder %s12999_s8, %s12999_s8 }
  0x1d   :  { %p13006_p0 = por %p13005_p13, %p13004_p12 }
  0x1f   :  { %p13007_p1 = pnand %p13006_p0, %p13000_p11 }
  0x21   :  { %13010 = shalt.err (!%p13007_p1)
}
  0x22   :  { %s13043_s0 = smov 256   ;;  %s13044_s9 = smov 16  }
  0x23   :  { %34 = dma.hbm_to_vmem [thread:$0]  %s13800_s1, 2048, %s29_s27, [#allocation6], %s13043_s0, %s13043_s0, %s13044_s9  }
  0x24   :  { %13033 = dma.done.wait [#allocation3], 256  }
  0x25   :  { %13034 = vsyncadd [#allocation3], 4294967040 }
  0x26   :  { %13035 = dma.done.wait [#allocation6], 2048  }
  0x27   :  { %13036 = vsyncadd [#allocation6], 4294965248  ;;  %vm69_vm0 = vcmask 261120   ;;  %v45_v0 = vld [vmem:[#allocation5] sm:$0xff]  ;;  %v13107_v1 = vld [vmem:[#allocation5 + $0x10] sm:$0xff]  ;;  %v13045_v46 = vmov 0.0  }
  0x28   :  { %v47_v2 = vld [vmem:[#allocation5 + $0x20] sm:$0xff]  ;;  %v77_v3 = vand.u32 4294901760, %v45_v0  ;;  %v80_v4 = vand.u32 4294901760, %v13107_v1  ;;  %v48_v5 = vld [vmem:[#allocation5 + $0x30] sm:$0xff]  ;;  %v44_v8 = vld [vmem:[#allocation2 + $0x8] sm:$0xff]  ;;  %11687 = vmatprep.subr.mxu1 %v13045_v46  ;;  %vm13046_vm1 = vmmov 0  }
  0x29   :  { %v83_v6 = vand.u32 4294901760, %v47_v2  ;;  %v43_v7 = vld [vmem:[#allocation2] sm:$0xff]  ;;  %v86_v9 = vand.u32 4294901760, %v48_v5  ;;  %v74_v11 = vsel %vm69_vm0, %v44_v8, 0  ;;  %11689 = vmatprep.mubr.msk.f32.mxu1 %vm13046_vm1, %v13045_v46  ;;  %s13047_s13 = smov 96   ;;  %s13048_s14 = smov 64  }
  0x2a   :  { %v71_v10 = vsel %vm69_vm0, %v43_v7, 0  ;;  %v13112_v12 = vpack.c.bf16 %v80_v4, %v77_v3  ;;  %v13116_v14 = vand.u32 4294901760, %v74_v11  ;;  %v167_v15 = vsub.f32 %v45_v0, %v77_v3  ;;  %v11217_v47 = vld [vmem:[%s13801_s2] ss:$0 sm:$0xff]  ;;  %s13049_s15 = smov 88   ;;  %s13050_s16 = smov 120  }
  0x2b   :  { %v13114_v13 = vand.u32 4294901760, %v71_v10  ;;  %v13118_v16 = vpack.c.bf16 %v86_v9, %v83_v6  ;;  %v174_v17 = vsub.f32 %v13107_v1, %v80_v4  ;;  %v181_v18 = vsub.f32 %v47_v2, %v83_v6  ;;  %s13051_s17 = smov 56   ;;  %s13052_s18 = smov 80  }
  0x2c   :  { %v188_v19 = vsub.f32 %v48_v5, %v86_v9  ;;  %12468 = vmatprep.subr.bf16.mxu0 %v13112_v12  ;;  %v156_v21 = vsub.f32 %v74_v11, %v13116_v14  ;;  %v168_v22 = vand.u32 4294901760, %v167_v15  ;;  %vm607_vm2 = vcmask 64512   ;;  %s13053_s19 = smov 112   ;;  %s13054_s20 = smov 32  }
  0x2d   :  { %v146_v20 = vsub.f32 %v71_v10, %v13114_v13  ;;  %12470 = vmatpush3.bf16.msra.mxu0 %v13112_v12  ;;  %v175_v23 = vand.u32 4294901760, %v174_v17  ;;  %v182_v24 = vand.u32 4294901760, %v181_v18  ;;  %v12483_v42 = vpack.c.bf16 %v174_v17, %v167_v15  ;;  %s13055_s21 = smov 48   ;;  %s13056_s24 = smov 104  }
  0x2e   :  { %v189_v25 = vand.u32 4294901760, %v188_v19  ;;  %12472 = vmatprep.subr.bf16.mxu0 %v13118_v16  ;;  %v157_v27 = vand.u32 4294901760, %v156_v21  ;;  %v169_v28 = vsub.f32 %v167_v15, %v168_v22  ;;  %v12487_v43 = vpack.c.bf16 %v188_v19, %v181_v18  ;;  %s13057_s25 = smov 72   ;;  %s13058_s26 = smov 40  }
  0x2f   :  { %v147_v26 = vand.u32 4294901760, %v146_v20  ;;  %v176_v29 = vsub.f32 %v174_v17, %v175_v23  ;;  %v183_v30 = vsub.f32 %v181_v18, %v182_v24  ;;  %v12499_v44 = vpack.c.bf16 %v175_v23, %v168_v22  ;;  %s13059_s12 = smov [#allocation7]  }
  0x30   :  { %v190_v31 = vsub.f32 %v188_v19, %v189_v25  ;;  %v158_v33 = vsub.f32 %v156_v21, %v157_v27  ;;  %v170_v34 = vand.u32 4294901760, %v169_v28  ;;  %v12503_v45 = vpack.c.bf16 %v189_v25, %v182_v24 }
  0x31   :  { %v148_v32 = vsub.f32 %v146_v20, %v147_v26  ;;  %12474 = vmatpush3.bf16.msra.mxu0 %v13118_v16  ;;  %v177_v35 = vand.u32 4294901760, %v176_v29  ;;  %v184_v36 = vand.u32 4294901760, %v183_v30  ;;  %vm10570_vm3 = vcmask 523264  }
  0x32   :  { %v191_v37 = vand.u32 4294901760, %v190_v31  ;;  %v159_v39 = vand.u32 4294901760, %v158_v33 }
  0x33   :  { %v149_v38 = vand.u32 4294901760, %v148_v32  ;;  %v12475_v40 = vpack.c.bf16 %v177_v35, %v170_v34 }
  0x34   :  { %v12479_v41 = vpack.c.bf16 %v191_v37, %v184_v36 }
  0x35   :  { %11629 = vmatprep.mubr.f32.mxu0 %v149_v38  ;;  %12476 = vmatprep.subr.bf16.mxu0 %v12475_v40 }
  0x36   :  { %11630 = vmatmul.mubr.f32.vlgmr.msra.gmra.mrb[0].mxu0 %v159_v39 }
  0x37   :  { %12478 = vmatpush3.bf16.msra.mxu0 %v12475_v40  ;;  %11640 = vmatprep.mubr.f32.mxu0 %v13114_v13 }
  0x38   :  { %12480 = vmatprep.subr.bf16.mxu0 %v12479_v41 }
  0x3b   :  { %12482 = vmatpush3.bf16.msra.mxu0 %v12479_v41 }
  0x3c   :  { %12484 = vmatprep.subr.bf16.mxu0 %v12483_v42 }
  0x3e   :  { %11641 = vmatmul.mubr.f32.vlgmr.msra.gmra.mrb[0].mxu0 %v13116_v14 }
  0x3f   :  { %12486 = vmatpush3.bf16.msra.mxu0 %v12483_v42  ;;  %11651 = vmatprep.mubr.f32.mxu0 %v146_v20 }
  0x40   :  { %12488 = vmatprep.subr.bf16.mxu0 %v12487_v43 }
  0x43   :  { %12490 = vmatpush3.bf16.msra.mxu0 %v12487_v43 }
  0x44   :  { %12492 = vmatprep.subr.bf16.mxu0 %v13112_v12 }
  0x46   :  { %11652 = vmatmul.mubr.f32.vlgmr.msra.gmra.mrb[0].mxu0 %v156_v21 }
  0x47   :  { %12494 = vmatpush3.bf16.msra.mxu0 %v13112_v12  ;;  %11662 = vmatprep.mubr.f32.mxu0 %v147_v26 }
  0x48   :  { %12496 = vmatprep.subr.bf16.mxu0 %v13118_v16 }
  0x4b   :  { %12498 = vmatpush3.bf16.msra.mxu0 %v13118_v16 }
  0x4c   :  { %12500 = vmatprep.subr.bf16.mxu0 %v12499_v44 }
  0x4e   :  { %11663 = vmatmul.mubr.f32.vlgmr.msra.gmra.mrb[0].mxu0 %v157_v27 }
  0x4f   :  { %12502 = vmatpush3.bf16.msra.mxu0 %v12499_v44  ;;  %11673 = vmatprep.mubr.f32.mxu0 %v13114_v13 }
  0x50   :  { %12504 = vmatprep.subr.bf16.mxu0 %v12503_v45 }
  0x53   :  { %12506 = vmatpush3.bf16.msra.mxu0 %v12503_v45 }
  0x54   :  { %12508 = vmatprep.subr.bf16.mxu0 %v13112_v12 }
  0x56   :  { %11674 = vmatmul.mubr.f32.vlgmr.msra.gmra.mrb[0].mxu0 %v13116_v14 }
  0x57   :  { %12510 = vmatpush3.bf16.msra.mxu0 %v13112_v12  ;;  %11684 = vmatprep.mubr.f32.mxu0 %v13114_v13 }
  0x58   :  { %12512 = vmatprep.subr.bf16.mxu0 %v13118_v16 }
  0x5b   :  { %12514 = vmatpush3.bf16.msra.mxu0 %v13118_v16 }
  0x5c   :  { %11747 = vmatprep.subr.mxu0 %v13045_v46 }
  0x5e   :  { %11685 = vmatmul.mubr.f32.vlgmr.msra.gmra.mrb[0].mxu0 %v13116_v14 }
  0x5f   :  { %11749 = vmatprep.mubr.msk.f32.mxu0 %vm13046_vm1, %v13045_v46 }
 0x131   :  { %v11686_v48 = vpop.f32.mrb[0].mxu0 }
 0x132   :  { %v594_v49 = vpop.f32.mrb[1].mxu0  ;;  %v13153_v51 = vadd.f32 %v11686_v48, %v11217_v47 }
 0x133   :  { %v13150_v50 = vadd.f32 %v11217_v47, %v594_v49 }
 0x134   :  { %v1061_v3 = vsel %vm607_vm2, %v13153_v51, 0 }
 0x135   :  { %605 = vrot.lane.b32.xlu0 %v13150_v50, %s13047_s13  ;;  %v608_v52 = vsel %vm607_vm2, %v13150_v50, 0  ;;  %v1131_v5 = vand.u32 4294901760, %v1061_v3 }
 0x136   :  { %v678_v53 = vand.u32 4294901760, %v608_v52 }
 0x137   :  { %v1132_v7 = vsub.f32 %v1061_v3, %v1131_v5 }
 0x138   :  { %v679_v54 = vsub.f32 %v608_v52, %v678_v53 }
 0x139   :  { %1059 = vrot.lane.b32.xlu0 %v13153_v51, %s13047_s13  ;;  %v1133_v9 = vand.u32 4294901760, %v1132_v7  ;;  %s11204_s13 = sshll.u32 %s13059_s12, 4  ;;  %s11205_s13 = int_to_ptr.vmem [resolvable:$true] %s11204_s13 }
 0x13a   :  { %v680_v55 = vand.u32 4294901760, %v679_v54  ;;  %p13016_p3 = scmp.lt.s32.totalorder %s11205_s13, %s11205_s13 }
 0x13b   :  { %v1134_v11 = vsub.f32 %v1132_v7, %v1133_v9 }
 0x13c   :  { %v681_v58 = vsub.f32 %v679_v54, %v680_v55 }
 0x13d   :  { %1987 = vrot.lane.b32.xlu0 %v13153_v51, %s13048_s14  ;;  %v1135_v13 = vand.u32 4294901760, %v1134_v11 }
 0x13e   :  { %v682_v61 = vand.u32 4294901760, %v681_v58 }
 0x141   :  { %2895 = vrot.lane.b32.xlu0 %v13153_v51, %s13049_s15 }
 0x1a7   :  { %v606_v56 = vpop.permute.xlu0 %605 }
 0x1a8   :  { %v610_v57 = vsel %vm607_vm2, %v606_v56, 0 }
 0x1a9   :  { %v613_v59 = vand.u32 4294901760, %v610_v57 }
 0x1ab   :  { %v690_v60 = vsub.f32 %v610_v57, %v613_v59  ;;  %11688 = vmatpush3.xpose.msra.mxu1 %v613_v59  ;;  %v1060_v2 = vpop.permute.xlu0 %1059 }
 0x1ac   :  { %11692 = vmatprep.subr.mxu1 %v13045_v46  ;;  %v1063_v4 = vsel %vm607_vm2, %v1060_v2, 0 }
 0x1ad   :  { %v691_v62 = vand.u32 4294901760, %v690_v60  ;;  %v1066_v6 = vand.u32 4294901760, %v1063_v4 }
 0x1ae   :  { %11690 = vmatmul.mubr.f32.vlgmr.msra.gmra.mrb[0].mxu1 %v682_v61 }
 0x1af   :  { %v692_v63 = vsub.f32 %v690_v60, %v691_v62  ;;  %11694 = vmatprep.mubr.msk.f32.mxu1 %vm13046_vm1, %v13045_v46  ;;  %v1143_v8 = vsub.f32 %v1063_v4, %v1066_v6  ;;  %v1988_v15 = vpop.permute.xlu0 %1987 }
 0x1b0   :  { %v13200_v16 = vand.u32 4294901760, %v1988_v15 }
 0x1b1   :  { %v693_v0 = vand.u32 4294901760, %v692_v63  ;;  %v1144_v10 = vand.u32 4294901760, %v1143_v8 }
 0x1b2   :  { %v2071_v40 = vsub.f32 %v1988_v15, %v13200_v16 }
 0x1b3   :  { %11693 = vmatpush3.xpose.msra.mxu1 %v693_v0  ;;  %v1145_v12 = vsub.f32 %v1143_v8, %v1144_v10  ;;  %v2896_v25 = vpop.permute.xlu0 %2895 }
 0x1b4   :  { %11697 = vmatprep.subr.mxu1 %v13045_v46  ;;  %v2072_v44 = vand.u32 4294901760, %v2071_v40  ;;  %v2899_v56 = vsel %vm607_vm2, %v2896_v25, 0 }
 0x1b5   :  { %v1146_v14 = vand.u32 4294901760, %v1145_v12  ;;  %v13242_v58 = vand.u32 4294901760, %v2899_v56 }
 0x1b6   :  { %11695 = vmatmul.mubr.f32.vlgmr.msra.gmra.mrb[0].mxu1 %v678_v53  ;;  %v2073_v48 = vsub.f32 %v2071_v40, %v2072_v44 }
 0x1b7   :  { %11698 = vmatpush3.xpose.msra.mxu1 %v690_v60  ;;  %11699 = vmatprep.mubr.msk.f32.mxu1 %vm13046_vm1, %v13045_v46  ;;  %v2979_v61 = vsub.f32 %v2899_v56, %v13242_v58 }
 0x1b8   :  { %11702 = vmatprep.subr.mxu1 %v13045_v46 }
 0x1b9   :  { %v2980_v63 = vand.u32 4294901760, %v2979_v61 }
 0x1bb   :  { %v2981_v3 = vsub.f32 %v2979_v61, %v2980_v63 }
 0x1be   :  { %11700 = vmatmul.mubr.f32.vlgmr.msra.gmra.mrb[0].mxu1 %v679_v54 }
 0x1bf   :  { %11703 = vmatpush3.xpose.msra.mxu1 %v613_v59  ;;  %11704 = vmatprep.mubr.msk.f32.mxu1 %vm13046_vm1, %v13045_v46 }
 0x1c0   :  { %11707 = vmatprep.subr.mxu1 %v13045_v46 }
 0x1c6   :  { %11705 = vmatmul.mubr.f32.vlgmr.msra.gmra.mrb[0].mxu1 %v680_v55 }
 0x1c7   :  { %11708 = vmatpush3.xpose.msra.mxu1 %v691_v62  ;;  %11709 = vmatprep.mubr.msk.f32.mxu1 %vm13046_vm1, %v13045_v46 }
 0x1c8   :  { %11712 = vmatprep.subr.mxu1 %v13045_v46 }
 0x1ce   :  { %11710 = vmatmul.mubr.f32.vlgmr.msra.gmra.mrb[0].mxu1 %v678_v53 }
 0x1cf   :  { %11713 = vmatpush3.xpose.msra.mxu1 %v613_v59  ;;  %11714 = vmatprep.mubr.msk.f32.mxu1 %vm13046_vm1, %v13045_v46 }
 0x1d0   :  { %11717 = vmatprep.subr.mxu1 %v13045_v46 }
 0x1d6   :  { %11715 = vmatmul.mubr.f32.vlgmr.msra.gmra.mrb[0].mxu1 %v678_v53  ;;  %v2074_v53 = vand.u32 4294901760, %v2073_v48 }
 0x1d7   :  { %11718 = vmatpush3.xpose.msra.mxu1 %v1066_v6  ;;  %11719 = vmatprep.mubr.msk.f32.mxu1 %vm13046_vm1, %v13045_v46 }
 0x1d8   :  { %11722 = vmatprep.subr.mxu1 %v13045_v46 }
 0x1da   :  { %11720 = vmatmul.mubr.f32.vlgmr.msra.gmra.mrb[2].mxu1 %v1135_v13 }
 0x1db   :  { %11723 = vmatpush3.xpose.msra.mxu1 %v1146_v14  ;;  %11724 = vmatprep.mubr.msk.f32.mxu1 %vm13046_vm1, %v13045_v46 }
 0x1dc   :  { %11727 = vmatprep.subr.mxu1 %v13045_v46 }
 0x1e2   :  { %11725 = vmatmul.mubr.f32.vlgmr.msra.gmra.mrb[2].mxu1 %v1131_v5 }
 0x1e3   :  { %11728 = vmatpush3.xpose.msra.mxu1 %v1143_v8  ;;  %11729 = vmatprep.mubr.msk.f32.mxu1 %vm13046_vm1, %v13045_v46  ;;  %v2982_v8 = vand.u32 4294901760, %v2981_v3 }
 0x1e4   :  { %11732 = vmatprep.subr.mxu1 %v13045_v46 }
 0x1ea   :  { %11730 = vmatmul.mubr.f32.vlgmr.msra.gmra.mrb[2].mxu1 %v1132_v7 }
 0x1eb   :  { %11733 = vmatpush3.xpose.msra.mxu1 %v1066_v6  ;;  %11734 = vmatprep.mubr.msk.f32.mxu1 %vm13046_vm1, %v13045_v46 }
 0x1ec   :  { %11737 = vmatprep.subr.mxu1 %v13045_v46 }
 0x1f2   :  { %11735 = vmatmul.mubr.f32.vlgmr.msra.gmra.mrb[2].mxu1 %v1133_v9 }
 0x1f3   :  { %11738 = vmatpush3.xpose.msra.mxu1 %v1144_v10  ;;  %11739 = vmatprep.mubr.msk.f32.mxu1 %vm13046_vm1, %v13045_v46 }
 0x1f4   :  { %11742 = vmatprep.subr.mxu1 %v13045_v46 }
 0x1fa   :  { %11740 = vmatmul.mubr.f32.vlgmr.msra.gmra.mrb[2].mxu1 %v1131_v5 }
 0x1fb   :  { %11743 = vmatpush3.xpose.msra.mxu1 %v1066_v6  ;;  %11744 = vmatprep.mubr.msk.f32.mxu1 %vm13046_vm1, %v13045_v46 }
 0x1fc   :  { %11777 = vmatprep.subr.mxu1 %v13045_v46 }
 0x202   :  { %11745 = vmatmul.mubr.f32.vlgmr.msra.gmra.mrb[2].mxu1 %v1131_v5 }
 0x203   :  { %11778 = vmatpush3.msra.mxu1 %v13200_v16  ;;  %11779 = vmatprep.mubr.msk.f32.mxu1 %vm13046_vm1, %v13045_v46 }
 0x204   :  { %11782 = vmatprep.subr.mxu1 %v13045_v46 }
 0x2a9   :  { %v1054_v17 = vpop.f32.mrb[0].mxu1 }
 0x2aa   :  { %v1511_v18 = vmul.f32 0.35355338, %v1054_v17  ;;  %v11716_v19 = vpop.f32.mrb[1].mxu1 }
 0x2ac   :  { %v1513_v20 = vsel %vm607_vm2, %v1511_v18, -inf }
 0x2ad   :  { %1514 = vmax.xlane.f32.xlu0 %v1513_v20 }
 0x2c3   :  { %1535 = vrot.lane.b32.xlu0 %v13150_v50, %s13048_s14 }
 0x2c7   :  { %2441 = vrot.lane.b32.xlu0 %v13150_v50, %s13049_s15 }
 0x2d5   :  { %v1507_v21 = vpop.f32.mrb[2].mxu1 }
 0x2d6   :  { %v1512_v22 = vmul.f32 0.35355338, %v1507_v21  ;;  %v11746_v23 = vpop.f32.mrb[3].mxu1 }
 0x2d8   :  { %v1516_v24 = vsel %vm607_vm2, %v1512_v22, -inf }
 0x2d9   :  { %1517 = vmax.xlane.f32.xlu1 %v1516_v24 }
 0x33a   :  { %v1515_v26 = vpop.xlane.xlu0 %1514 }
 0x33b   :  { %v1519_v34 = vsub.f32 %v1511_v18, %v1515_v26 }
 0x33d   :  { %v1521_v35 = vmul.f32 1.442695, %v1519_v34 }
 0x33e   :  { %v13212_v27 = vpop.permute.xlu0 %1535 }
 0x33f   :  { %v13215_v28 = vand.u32 4294901760, %v13212_v27 }
 0x341   :  { %11748 = vmatpush3.msra.mxu0 %v13215_v28  ;;  %v1619_v4 = vsub.f32 %v13212_v27, %v13215_v28 }
 0x342   :  { %11752 = vmatprep.subr.mxu0 %v13045_v46  ;;  %v2442_v18 = vpop.permute.xlu0 %2441 }
 0x343   :  { %v1620_v10 = vand.u32 4294901760, %v1619_v4  ;;  %v2445_v20 = vsel %vm607_vm2, %v2442_v18, 0 }
 0x345   :  { %v1621_v13 = vsub.f32 %v1619_v4, %v1620_v10 }
 0x366   :  { %v1518_v29 = vpop.xlane.xlu1 %1517 }
 0x367   :  { %v1520_v30 = vsub.f32 %v1512_v22, %v1518_v29  ;;  %v2448_v22 = vand.u32 4294901760, %v2445_v20 }
 0x369   :  { %v1523_v31 = vmul.f32 1.442695, %v1520_v30  ;;  %v2525_v24 = vsub.f32 %v2445_v20, %v2448_v22 }
 0x36b   :  { %12922 = vpow2.f32 %v1523_v31  ;;  %v2526_v26 = vand.u32 4294901760, %v2525_v24 }
 0x36c   :  { %12924 = vpow2.f32 %v1521_v35 }
 0x36d   :  { %v2527_v29 = vsub.f32 %v2525_v24, %v2526_v26 }
 0x36f   :  { %v2528_v31 = vand.u32 4294901760, %v2527_v29 }
 0x375   :  { %v12923_v32 = vpop.eup %12922 }
 0x376   :  { %v1528_v33 = vsel %vm607_vm2, %v12923_v32, 0.0  ;;  %v12925_v36 = vpop.eup %12924 }
 0x377   :  { %1529 = vadd.xlane.f32.xlu1 %v1528_v33  ;;  %v1525_v37 = vsel %vm607_vm2, %v12925_v36, 0.0 }
 0x388   :  { %2893 = vrot.lane.b32.xlu1 %v13153_v51, %s13050_s16 }
 0x3ac   :  { %1526 = vadd.xlane.f32.xlu1 %v1525_v37 }
 0x3bd   :  { %2439 = vrot.lane.b32.xlu1 %v13150_v50, %s13050_s16 }
 0x404   :  { %v1530_v38 = vpop.xlane.xlu1 %1529 }
 0x405   :  { %12926 = vrcp.f32 %v1530_v38 }
 0x408   :  { %v2894_v54 = vpop.permute.xlu1 %2893 }
 0x409   :  { %v2897_v55 = vsel %vm607_vm2, %v2894_v54, 0 }
 0x40a   :  { %v13239_v57 = vand.u32 4294901760, %v2897_v55 }
 0x40c   :  { %v2968_v60 = vsub.f32 %v2897_v55, %v13239_v57 }
 0x40e   :  { %v2969_v62 = vand.u32 4294901760, %v2968_v60 }
 0x40f   :  { %v12927_v39 = vpop.eup %12926 }
 0x410   :  { %v1534_v41 = vmul.f32 %v12927_v39, %v12923_v32  ;;  %v2970_v0 = vsub.f32 %v2968_v60, %v2969_v62 }
 0x412   :  { %v1991_v42 = vsel %vm607_vm2, %v1534_v41, 0  ;;  %v2971_v6 = vand.u32 4294901760, %v2970_v0 }
 0x413   :  { %v2059_v43 = vand.u32 4294901760, %v1991_v42 }
 0x415   :  { %v2060_v45 = vsub.f32 %v1991_v42, %v2059_v43 }
 0x417   :  { %v2061_v47 = vand.u32 4294901760, %v2060_v45 }
 0x419   :  { %v2062_v49 = vsub.f32 %v2060_v45, %v2061_v47 }
 0x41b   :  { %v2063_v52 = vand.u32 4294901760, %v2062_v49 }
 0x41d   :  { %11780 = vmatmul.mubr.f32.vlgmr.msra.gmra.mrb[4].mxu1 %v2063_v52 }
 0x41e   :  { %11783 = vmatpush3.msra.mxu1 %v2074_v53  ;;  %11784 = vmatprep.mubr.msk.f32.mxu1 %vm13046_vm1, %v13045_v46 }
 0x41f   :  { %11787 = vmatprep.subr.mxu1 %v13045_v46 }
 0x425   :  { %11785 = vmatmul.mubr.f32.vlgmr.msra.gmra.mrb[4].mxu1 %v2059_v43 }
 0x426   :  { %11788 = vmatpush3.msra.mxu1 %v2071_v40  ;;  %11789 = vmatprep.mubr.msk.f32.mxu1 %vm13046_vm1, %v13045_v46 }
 0x427   :  { %11792 = vmatprep.subr.mxu1 %v13045_v46 }
 0x42d   :  { %11790 = vmatmul.mubr.f32.vlgmr.msra.gmra.mrb[4].mxu1 %v2060_v45 }
 0x42e   :  { %11793 = vmatpush3.msra.mxu1 %v13200_v16  ;;  %11794 = vmatprep.mubr.msk.f32.mxu1 %vm13046_vm1, %v13045_v46 }
 0x42f   :  { %11797 = vmatprep.subr.mxu1 %v13045_v46 }
 0x435   :  { %11795 = vmatmul.mubr.f32.vlgmr.msra.gmra.mrb[4].mxu1 %v2061_v47 }
 0x436   :  { %11798 = vmatpush3.msra.mxu1 %v2072_v44  ;;  %11799 = vmatprep.mubr.msk.f32.mxu1 %vm13046_vm1, %v13045_v46 }
 0x437   :  { %11802 = vmatprep.subr.mxu1 %v13045_v46 }
 0x439   :  { %v1527_v59 = vpop.xlane.xlu1 %1526 }
 0x43a   :  { %12928 = vrcp.f32 %v1527_v59 }
 0x43d   :  { %11800 = vmatmul.mubr.f32.vlgmr.msra.gmra.mrb[4].mxu1 %v2059_v43  ;;  %v2440_v17 = vpop.permute.xlu1 %2439 }
 0x43e   :  { %11803 = vmatpush3.msra.mxu1 %v13200_v16  ;;  %11804 = vmatprep.mubr.msk.f32.mxu1 %vm13046_vm1, %v13045_v46  ;;  %v1622_v16 = vand.u32 4294901760, %v1621_v13  ;;  %v2443_v19 = vsel %vm607_vm2, %v2440_v17, 0 }
 0x43f   :  { %11837 = vmatprep.subr.mxu1 %v13045_v46  ;;  %v2513_v21 = vand.u32 4294901760, %v2443_v19 }
 0x441   :  { %v2514_v23 = vsub.f32 %v2443_v19, %v2513_v21 }
 0x443   :  { %v2515_v25 = vand.u32 4294901760, %v2514_v23 }
 0x444   :  { %v12929_v2 = vpop.eup %12928 }
 0x445   :  { %v1532_v5 = vmul.f32 %v12929_v2, %v12925_v36  ;;  %11805 = vmatmul.mubr.f32.vlgmr.msra.gmra.mrb[4].mxu1 %v2059_v43  ;;  %v2516_v27 = vsub.f32 %v2514_v23, %v2515_v25 }
 0x446   :  { %11838 = vmatpush3.xpose.msra.mxu1 %v13242_v58  ;;  %11839 = vmatprep.mubr.msk.f32.mxu1 %vm13046_vm1, %v13045_v46 }
 0x447   :  { %11842 = vmatprep.subr.mxu1 %v13045_v46  ;;  %v1539_v7 = vsel %vm607_vm2, %v1532_v5, 0  ;;  %v2517_v30 = vand.u32 4294901760, %v2516_v27 }
 0x448   :  { %v1607_v9 = vand.u32 4294901760, %v1539_v7 }
 0x449   :  { %11840 = vmatmul.mubr.f32.vlgmr.msra.gmra.mrb[6].mxu1 %v2971_v6 }
 0x44a   :  { %11843 = vmatpush3.xpose.msra.mxu1 %v2982_v8  ;;  %11844 = vmatprep.mubr.msk.f32.mxu1 %vm13046_vm1, %v13045_v46  ;;  %v1608_v11 = vsub.f32 %v1539_v7, %v1607_v9 }
 0x44b   :  { %11847 = vmatprep.subr.mxu1 %v13045_v46 }
 0x44c   :  { %v1609_v12 = vand.u32 4294901760, %v1608_v11 }
 0x44e   :  { %v1610_v14 = vsub.f32 %v1608_v11, %v1609_v12 }
 0x450   :  { %v1611_v15 = vand.u32 4294901760, %v1610_v14 }
 0x451   :  { %11845 = vmatmul.mubr.f32.vlgmr.msra.gmra.mrb[6].mxu1 %v13239_v57 }
 0x452   :  { %11848 = vmatpush3.xpose.msra.mxu1 %v2979_v61  ;;  %11750 = vmatmul.mubr.f32.vlgmr.msra.gmra.mrb[2].mxu0 %v1611_v15 }
 0x453   :  { %11753 = vmatpush3.msra.mxu0 %v1622_v16  ;;  %11849 = vmatprep.mubr.msk.f32.mxu1 %vm13046_vm1, %v13045_v46 }
 0x454   :  { %11852 = vmatprep.subr.mxu1 %v13045_v46  ;;  %11754 = vmatprep.mubr.msk.f32.mxu0 %vm13046_vm1, %v13045_v46 }
 0x455   :  { %11757 = vmatprep.subr.mxu0 %v13045_v46 }
 0x459   :  { %11850 = vmatmul.mubr.f32.vlgmr.msra.gmra.mrb[6].mxu1 %v2968_v60 }
 0x45a   :  { %11853 = vmatpush3.xpose.msra.mxu1 %v13242_v58  ;;  %11755 = vmatmul.mubr.f32.vlgmr.msra.gmra.mrb[2].mxu0 %v1607_v9 }
 0x45b   :  { %11758 = vmatpush3.msra.mxu0 %v1619_v4  ;;  %11854 = vmatprep.mubr.msk.f32.mxu1 %vm13046_vm1, %v13045_v46 }
 0x45c   :  { %11857 = vmatprep.subr.mxu1 %v13045_v46  ;;  %11759 = vmatprep.mubr.msk.f32.mxu0 %vm13046_vm1, %v13045_v46 }
 0x45d   :  { %11762 = vmatprep.subr.mxu0 %v13045_v46 }
 0x461   :  { %11855 = vmatmul.mubr.f32.vlgmr.msra.gmra.mrb[6].mxu1 %v2969_v62 }
 0x462   :  { %11858 = vmatpush3.xpose.msra.mxu1 %v2980_v63  ;;  %11760 = vmatmul.mubr.f32.vlgmr.msra.gmra.mrb[2].mxu0 %v1608_v11 }
 0x463   :  { %11763 = vmatpush3.msra.mxu0 %v13215_v28  ;;  %11859 = vmatprep.mubr.msk.f32.mxu1 %vm13046_vm1, %v13045_v46 }
 0x464   :  { %11862 = vmatprep.subr.mxu1 %v13045_v46  ;;  %11764 = vmatprep.mubr.msk.f32.mxu0 %vm13046_vm1, %v13045_v46 }
 0x465   :  { %11767 = vmatprep.subr.mxu0 %v13045_v46 }
 0x469   :  { %11860 = vmatmul.mubr.f32.vlgmr.msra.gmra.mrb[6].mxu1 %v13239_v57 }
 0x46a   :  { %11863 = vmatpush3.xpose.msra.mxu1 %v13242_v58  ;;  %11765 = vmatmul.mubr.f32.vlgmr.msra.gmra.mrb[2].mxu0 %v1609_v12 }
 0x46b   :  { %11768 = vmatpush3.msra.mxu0 %v1620_v10  ;;  %11864 = vmatprep.mubr.msk.f32.mxu1 %vm13046_vm1, %v13045_v46 }
 0x46c   :  { %11769 = vmatprep.mubr.msk.f32.mxu0 %vm13046_vm1, %v13045_v46  ;;  %11772 = vmatprep.subr.mxu0 %v13045_v46 }
 0x46d   :  { %11897 = vmatprep.subr.mxu1 %v13045_v46 }
 0x471   :  { %11865 = vmatmul.mubr.f32.vlgmr.msra.gmra.mrb[6].mxu1 %v13239_v57 }
 0x472   :  { %11770 = vmatmul.mubr.f32.vlgmr.msra.gmra.mrb[2].mxu0 %v1607_v9  ;;  %11899 = vmatprep.mubr.msk.f32.mxu1 %vm13046_vm1, %v13045_v46 }
 0x473   :  { %11773 = vmatpush3.msra.mxu0 %v13215_v28  ;;  %11774 = vmatprep.mubr.msk.f32.mxu0 %vm13046_vm1, %v13045_v46 }
 0x474   :  { %11807 = vmatprep.subr.mxu0 %v13045_v46 }
 0x47a   :  { %11775 = vmatmul.mubr.f32.vlgmr.msra.gmra.mrb[2].mxu0 %v1607_v9 }
 0x47b   :  { %11808 = vmatpush3.xpose.msra.mxu0 %v2448_v22  ;;  %11809 = vmatprep.mubr.msk.f32.mxu0 %vm13046_vm1, %v13045_v46 }
 0x47c   :  { %11812 = vmatprep.subr.mxu0 %v13045_v46 }
 0x47e   :  { %11810 = vmatmul.mubr.f32.vlgmr.msra.gmra.mrb[4].mxu0 %v2517_v30 }
 0x47f   :  { %11813 = vmatpush3.xpose.msra.mxu0 %v2528_v31  ;;  %11814 = vmatprep.mubr.msk.f32.mxu0 %vm13046_vm1, %v13045_v46 }
 0x480   :  { %11817 = vmatprep.subr.mxu0 %v13045_v46 }
 0x486   :  { %11815 = vmatmul.mubr.f32.vlgmr.msra.gmra.mrb[4].mxu0 %v2513_v21 }
 0x487   :  { %11818 = vmatpush3.xpose.msra.mxu0 %v2525_v24  ;;  %11819 = vmatprep.mubr.msk.f32.mxu0 %vm13046_vm1, %v13045_v46 }
 0x488   :  { %11822 = vmatprep.subr.mxu0 %v13045_v46 }
 0x48e   :  { %11820 = vmatmul.mubr.f32.vlgmr.msra.gmra.mrb[4].mxu0 %v2514_v23 }
 0x48f   :  { %11823 = vmatpush3.xpose.msra.mxu0 %v2448_v22  ;;  %11824 = vmatprep.mubr.msk.f32.mxu0 %vm13046_vm1, %v13045_v46 }
 0x490   :  { %11827 = vmatprep.subr.mxu0 %v13045_v46 }
 0x496   :  { %11825 = vmatmul.mubr.f32.vlgmr.msra.gmra.mrb[4].mxu0 %v2515_v25 }
 0x497   :  { %11828 = vmatpush3.xpose.msra.mxu0 %v2526_v26  ;;  %11829 = vmatprep.mubr.msk.f32.mxu0 %vm13046_vm1, %v13045_v46 }
 0x498   :  { %11832 = vmatprep.subr.mxu0 %v13045_v46 }
 0x49e   :  { %11830 = vmatmul.mubr.f32.vlgmr.msra.gmra.mrb[4].mxu0 %v2513_v21 }
 0x49f   :  { %11833 = vmatpush3.xpose.msra.mxu0 %v2448_v22  ;;  %11834 = vmatprep.mubr.msk.f32.mxu0 %vm13046_vm1, %v13045_v46 }
 0x4a0   :  { %11867 = vmatprep.subr.mxu0 %v13045_v46 }
 0x4a6   :  { %11835 = vmatmul.mubr.f32.vlgmr.msra.gmra.mrb[4].mxu0 %v2513_v21 }
 0x4a7   :  { %11869 = vmatprep.mubr.msk.f32.mxu0 %vm13046_vm1, %v13045_v46 }
 0x518   :  { %v13318_v28 = vpop.f32.mrb[4].mxu1 }
 0x519   :  { %v11806_v32 = vpop.f32.mrb[5].mxu1 }
 0x544   :  { %v3343_v33 = vpop.f32.mrb[6].mxu1 }
 0x545   :  { %v3348_v34 = vmul.f32 0.35355338, %v3343_v33  ;;  %v11866_v35 = vpop.f32.mrb[7].mxu1 }
 0x547   :  { %v3352_v36 = vsel %vm607_vm2, %v3348_v34, -inf }
 0x548   :  { %3353 = vmax.xlane.f32.xlu0 %v3352_v36 }
 0x54d   :  { %v13321_v37 = vpop.f32.mrb[2].mxu0 }
 0x54e   :  { %v11776_v38 = vpop.f32.mrb[3].mxu0 }
 0x55e   :  { %3823 = vrot.lane.b32.xlu0 %v13153_v51, %s13051_s17 }
 0x562   :  { %5275 = vrot.lane.b32.xlu0 %v13150_v50, %s13052_s18 }
 0x579   :  { %v2889_v39 = vpop.f32.mrb[4].mxu0 }
 0x57a   :  { %v11836_v40 = vpop.f32.mrb[5].mxu0  ;;  %v3347_v41 = vmul.f32 0.35355338, %v2889_v39 }
 0x57c   :  { %v3349_v42 = vsel %vm607_vm2, %v3347_v41, -inf }
 0x581   :  { %3350 = vmax.xlane.f32.xlu0 %v3349_v42 }
 0x597   :  { %3371 = vrot.lane.b32.xlu0 %v13150_v50, %s13051_s17 }
 0x59b   :  { %4276 = vrot.lane.b32.xlu0 %v13107_v1, %s13054_s20 }
 0x5d5   :  { %v3354_v43 = vpop.xlane.xlu0 %3353 }
 0x5d6   :  { %v3356_v44 = vsub.f32 %v3348_v34, %v3354_v43 }
 0x5d8   :  { %v3359_v45 = vmul.f32 1.442695, %v3356_v44 }
 0x5d9   :  { %v3824_v47 = vpop.permute.xlu0 %3823 }
 0x5da   :  { %12930 = vpow2.f32 %v3359_v45  ;;  %v13327_v48 = vand.u32 4294901760, %v3824_v47 }
 0x5dc   :  { %11898 = vmatpush3.msra.mxu1 %v13327_v48  ;;  %v3907_v63 = vsub.f32 %v3824_v47, %v13327_v48 }
 0x5dd   :  { %11902 = vmatprep.subr.mxu1 %v13045_v46  ;;  %v5276_v53 = vpop.permute.xlu0 %5275 }
 0x5de   :  { %v3908_v4 = vand.u32 4294901760, %v3907_v63  ;;  %v5279_v1 = vsel %vm607_vm2, %v5276_v53, 0 }
 0x5df   :  { %v5282_v15 = vand.u32 4294901760, %v5279_v1 }
 0x5e0   :  { %v3909_v7 = vsub.f32 %v3907_v63, %v3908_v4 }
 0x5e1   :  { %v5359_v17 = vsub.f32 %v5279_v1, %v5282_v15 }
 0x5e2   :  { %v3910_v10 = vand.u32 4294901760, %v3909_v7 }
 0x5e3   :  { %v5360_v20 = vand.u32 4294901760, %v5359_v17 }
 0x5e4   :  { %v12931_v49 = vpop.eup %12930 }
 0x5e5   :  { %v3364_v52 = vsel %vm607_vm2, %v12931_v49, 0.0  ;;  %v5361_v23 = vsub.f32 %v5359_v17, %v5360_v20 }
 0x5e6   :  { %3365 = vadd.xlane.f32.xlu1 %v3364_v52 }
 0x5e7   :  { %v5362_v25 = vand.u32 4294901760, %v5361_v23 }
 0x5f7   :  { %5273 = vrot.lane.b32.xlu1 %v13150_v50, %s13053_s19 }
 0x5fb   :  { %5727 = vrot.lane.b32.xlu1 %v13153_v51, %s13053_s19 }
 0x5ff   :  { %5729 = vrot.lane.b32.xlu1 %v13153_v51, %s13052_s18 }
 0x60e   :  { %v3351_v54 = vpop.xlane.xlu0 %3350 }
 0x60f   :  { %v3355_v55 = vsub.f32 %v3347_v41, %v3351_v54 }
 0x611   :  { %v3357_v56 = vmul.f32 1.442695, %v3355_v55 }
 0x612   :  { %v13335_v57 = vpop.permute.xlu0 %3371 }
 0x613   :  { %v13338_v58 = vand.u32 4294901760, %v13335_v57  ;;  %12932 = vpow2.f32 %v3357_v56 }
 0x615   :  { %11868 = vmatpush3.msra.mxu0 %v13338_v58  ;;  %v3455_v27 = vsub.f32 %v13335_v57, %v13338_v58 }
 0x616   :  { %11872 = vmatprep.subr.mxu0 %v13045_v46  ;;  %v4277_v55 = vpop.permute.xlu0 %4276 }
 0x617   :  { %v3456_v32 = vand.u32 4294901760, %v3455_v27  ;;  %v4286_v56 = vand.u32 4294901760, %v4277_v55 }
 0x619   :  { %v3457_v35 = vsub.f32 %v3455_v27, %v3456_v32  ;;  %v4373_v57 = vsub.f32 %v4277_v55, %v4286_v56 }
 0x61b   :  { %v3458_v39 = vand.u32 4294901760, %v3457_v35 }
 0x61d   :  { %v13342_v59 = vpop.eup %12932 }
 0x61e   :  { %v3361_v60 = vsel %vm607_vm2, %v13342_v59, 0.0 }
 0x623   :  { %3362 = vadd.xlane.f32.xlu1 %v3361_v60 }
 0x673   :  { %v3366_v61 = vpop.xlane.xlu1 %3365 }
 0x674   :  { %12934 = vrcp.f32 %v3366_v61 }
 0x677   :  { %v5274_v11 = vpop.permute.xlu1 %5273 }
 0x678   :  { %v5277_v12 = vsel %vm607_vm2, %v5274_v11, 0 }
 0x679   :  { %v13364_v13 = vand.u32 4294901760, %v5277_v12 }
 0x67b   :  { %v5728_v14 = vpop.permute.xlu1 %5727  ;;  %v5348_v16 = vsub.f32 %v5277_v12, %v13364_v13 }
 0x67c   :  { %v5731_v40 = vsel %vm607_vm2, %v5728_v14, 0 }
 0x67d   :  { %v5349_v19 = vand.u32 4294901760, %v5348_v16  ;;  %v5801_v42 = vand.u32 4294901760, %v5731_v40 }
 0x67e   :  { %v12935_v62 = vpop.eup %12934 }
 0x67f   :  { %v3370_v0 = vmul.f32 %v12935_v62, %v12931_v49  ;;  %v5730_v18 = vpop.permute.xlu1 %5729  ;;  %v5350_v22 = vsub.f32 %v5348_v16, %v5349_v19  ;;  %v5802_v44 = vsub.f32 %v5731_v40, %v5801_v42 }
 0x680   :  { %v5733_v41 = vsel %vm607_vm2, %v5730_v18, 0 }
 0x681   :  { %v3827_v2 = vsel %vm607_vm2, %v3370_v0, 0  ;;  %v5351_v24 = vand.u32 4294901760, %v5350_v22  ;;  %v5736_v43 = vand.u32 4294901760, %v5733_v41  ;;  %v5803_v47 = vand.u32 4294901760, %v5802_v44 }
 0x682   :  { %v3895_v3 = vand.u32 4294901760, %v3827_v2 }
 0x683   :  { %v5813_v45 = vsub.f32 %v5733_v41, %v5736_v43  ;;  %v5804_v49 = vsub.f32 %v5802_v44, %v5803_v47 }
 0x684   :  { %v3896_v5 = vsub.f32 %v3827_v2, %v3895_v3 }
 0x685   :  { %v5805_v53 = vand.u32 4294901760, %v5804_v49 }
 0x686   :  { %v3897_v6 = vand.u32 4294901760, %v3896_v5 }
 0x688   :  { %v3898_v8 = vsub.f32 %v3896_v5, %v3897_v6 }
 0x68a   :  { %v3899_v9 = vand.u32 4294901760, %v3898_v8 }
 0x68c   :  { %11900 = vmatmul.mubr.f32.vlgmr.msra.gmra.mrb[8].mxu1 %v3899_v9 }
 0x68d   :  { %11903 = vmatpush3.msra.mxu1 %v3910_v10  ;;  %11904 = vmatprep.mubr.msk.f32.mxu1 %vm13046_vm1, %v13045_v46 }
 0x68e   :  { %11907 = vmatprep.subr.mxu1 %v13045_v46 }
 0x694   :  { %11905 = vmatmul.mubr.f32.vlgmr.msra.gmra.mrb[8].mxu1 %v3895_v3 }
 0x695   :  { %11908 = vmatpush3.msra.mxu1 %v3907_v63  ;;  %11909 = vmatprep.mubr.msk.f32.mxu1 %vm13046_vm1, %v13045_v46 }
 0x696   :  { %11912 = vmatprep.subr.mxu1 %v13045_v46 }
 0x69c   :  { %11910 = vmatmul.mubr.f32.vlgmr.msra.gmra.mrb[8].mxu1 %v3896_v5 }
 0x69d   :  { %11913 = vmatpush3.msra.mxu1 %v13327_v48  ;;  %11914 = vmatprep.mubr.msk.f32.mxu1 %vm13046_vm1, %v13045_v46 }
 0x69e   :  { %11917 = vmatprep.subr.mxu1 %v13045_v46 }
 0x6a4   :  { %11915 = vmatmul.mubr.f32.vlgmr.msra.gmra.mrb[8].mxu1 %v3897_v6 }
 0x6a5   :  { %11918 = vmatpush3.msra.mxu1 %v3908_v4  ;;  %11919 = vmatprep.mubr.msk.f32.mxu1 %vm13046_vm1, %v13045_v46 }
 0x6a6   :  { %11922 = vmatprep.subr.mxu1 %v13045_v46 }
 0x6ac   :  { %11920 = vmatmul.mubr.f32.vlgmr.msra.gmra.mrb[8].mxu1 %v3895_v3 }
 0x6ad   :  { %11923 = vmatpush3.msra.mxu1 %v13327_v48  ;;  %11924 = vmatprep.mubr.msk.f32.mxu1 %vm13046_vm1, %v13045_v46  ;;  %v5814_v48 = vand.u32 4294901760, %v5813_v45 }
 0x6ae   :  { %11987 = vmatprep.subr.mxu1 %v13045_v46 }
 0x6af   :  { %v5815_v52 = vsub.f32 %v5813_v45, %v5814_v48 }
 0x6b0   :  { %v3363_v21 = vpop.xlane.xlu1 %3362 }
 0x6b1   :  { %12936 = vrcp.f32 %v3363_v21  ;;  %v5816_v54 = vand.u32 4294901760, %v5815_v52  ;;  %v4779_v21 = vsel %vm607_vm2, %v13321_v37, 0 }
 0x6b2   :  { %v13447_v22 = vand.u32 4294901760, %v4779_v21 }
 0x6b4   :  { %11925 = vmatmul.mubr.f32.vlgmr.msra.gmra.mrb[8].mxu1 %v3895_v3  ;;  %v4851_v23 = vsub.f32 %v4779_v21, %v13447_v22 }
 0x6b5   :  { %11988 = vmatpush3.xpose.msra.mxu1 %v5282_v15  ;;  %11989 = vmatprep.mubr.msk.f32.mxu1 %vm13046_vm1, %v13045_v46 }
 0x6b6   :  { %11992 = vmatprep.subr.mxu1 %v13045_v46 }
 0x6b8   :  { %11990 = vmatmul.mubr.f32.vlgmr.msra.gmra.mrb[10].mxu1 %v5351_v24  ;;  %v4852_v24 = vand.u32 4294901760, %v4851_v23 }
 0x6b9   :  { %11993 = vmatpush3.xpose.msra.mxu1 %v5362_v25  ;;  %11994 = vmatprep.mubr.msk.f32.mxu1 %vm13046_vm1, %v13045_v46 }
 0x6ba   :  { %11997 = vmatprep.subr.mxu1 %v13045_v46  ;;  %v4853_v25 = vsub.f32 %v4851_v23, %v4852_v24 }
 0x6bb   :  { %v12937_v26 = vpop.eup %12936 }
 0x6bc   :  { %v3368_v29 = vmul.f32 %v12937_v26, %v13342_v59  ;;  %v12962_v26 = vld [vmem:[#allocation5] sm:$0xff] }
 0x6be   :  { %v3375_v30 = vsel %vm607_vm2, %v3368_v29, 0 }
 0x6bf   :  { %v13382_v31 = vand.u32 4294901760, %v3375_v30 }
 0x6c0   :  { %11995 = vmatmul.mubr.f32.vlgmr.msra.gmra.mrb[10].mxu1 %v13364_v13 }
 0x6c1   :  { %11998 = vmatpush3.xpose.msra.mxu1 %v5359_v17  ;;  %11999 = vmatprep.mubr.msk.f32.mxu1 %vm13046_vm1, %v13045_v46  ;;  %v3444_v33 = vsub.f32 %v3375_v30, %v13382_v31 }
 0x6c2   :  { %12002 = vmatprep.subr.mxu1 %v13045_v46 }
 0x6c3   :  { %v3445_v34 = vand.u32 4294901760, %v3444_v33 }
 0x6c5   :  { %v3446_v36 = vsub.f32 %v3444_v33, %v3445_v34 }
 0x6c7   :  { %v3447_v38 = vand.u32 4294901760, %v3446_v36 }
 0x6c8   :  { %12000 = vmatmul.mubr.f32.vlgmr.msra.gmra.mrb[10].mxu1 %v5348_v16 }
 0x6c9   :  { %12003 = vmatpush3.xpose.msra.mxu1 %v5282_v15  ;;  %11870 = vmatmul.mubr.f32.vlgmr.msra.gmra.mrb[6].mxu0 %v3447_v38  ;;  %v12963_v38 = vld [vmem:[#allocation5 + $0x20] sm:$0xff] }
 0x6ca   :  { %11873 = vmatpush3.msra.mxu0 %v3458_v39  ;;  %12004 = vmatprep.mubr.msk.f32.mxu1 %vm13046_vm1, %v13045_v46 }
 0x6cb   :  { %12007 = vmatprep.subr.mxu1 %v13045_v46  ;;  %11874 = vmatprep.mubr.msk.f32.mxu0 %vm13046_vm1, %v13045_v46 }
 0x6cc   :  { %11877 = vmatprep.subr.mxu0 %v13045_v46 }
 0x6d0   :  { %12005 = vmatmul.mubr.f32.vlgmr.msra.gmra.mrb[10].mxu1 %v5349_v19 }
 0x6d1   :  { %12008 = vmatpush3.xpose.msra.mxu1 %v5360_v20  ;;  %11875 = vmatmul.mubr.f32.vlgmr.msra.gmra.mrb[6].mxu0 %v13382_v31 }
 0x6d2   :  { %11878 = vmatpush3.msra.mxu0 %v3455_v27  ;;  %12009 = vmatprep.mubr.msk.f32.mxu1 %vm13046_vm1, %v13045_v46  ;;  %v4854_v27 = vand.u32 4294901760, %v4853_v25 }
 0x6d3   :  { %12012 = vmatprep.subr.mxu1 %v13045_v46  ;;  %11879 = vmatprep.mubr.msk.f32.mxu0 %vm13046_vm1, %v13045_v46 }
 0x6d4   :  { %11882 = vmatprep.subr.mxu0 %v13045_v46 }
 0x6d8   :  { %12010 = vmatmul.mubr.f32.vlgmr.msra.gmra.mrb[10].mxu1 %v13364_v13 }
 0x6d9   :  { %12013 = vmatpush3.xpose.msra.mxu1 %v5282_v15  ;;  %11880 = vmatmul.mubr.f32.vlgmr.msra.gmra.mrb[6].mxu0 %v3444_v33  ;;  %v4782_v33 = vsel %vm607_vm2, %v13318_v28, 0 }
 0x6da   :  { %11883 = vmatpush3.msra.mxu0 %v13338_v58  ;;  %12014 = vmatprep.mubr.msk.f32.mxu1 %vm13046_vm1, %v13045_v46 }
 0x6db   :  { %12017 = vmatprep.subr.mxu1 %v13045_v46  ;;  %11884 = vmatprep.mubr.msk.f32.mxu0 %vm13046_vm1, %v13045_v46 }
 0x6dc   :  { %11887 = vmatprep.subr.mxu0 %v13045_v46 }
 0x6e0   :  { %12015 = vmatmul.mubr.f32.vlgmr.msra.gmra.mrb[10].mxu1 %v13364_v13 }
 0x6e1   :  { %12018 = vmatpush3.xpose.msra.mxu1 %v5736_v43  ;;  %11885 = vmatmul.mubr.f32.vlgmr.msra.gmra.mrb[6].mxu0 %v3445_v34  ;;  %v4860_v34 = vand.u32 4294901760, %v4782_v33 }
 0x6e2   :  { %11888 = vmatpush3.msra.mxu0 %v3456_v32  ;;  %12019 = vmatprep.mubr.msk.f32.mxu1 %vm13046_vm1, %v13045_v46 }
 0x6e3   :  { %12022 = vmatprep.subr.mxu1 %v13045_v46  ;;  %11889 = vmatprep.mubr.msk.f32.mxu0 %vm13046_vm1, %v13045_v46  ;;  %v4861_v35 = vsub.f32 %v4782_v33, %v4860_v34 }
 0x6e4   :  { %12020 = vmatmul.mubr.f32.vlgmr.msra.gmra.mrb[12].mxu1 %v5805_v53  ;;  %11892 = vmatprep.subr.mxu0 %v13045_v46 }
 0x6e5   :  { %12023 = vmatpush3.xpose.msra.mxu1 %v5816_v54  ;;  %12024 = vmatprep.mubr.msk.f32.mxu1 %vm13046_vm1, %v13045_v46  ;;  %v4862_v36 = vand.u32 4294901760, %v4861_v35 }
 0x6e6   :  { %12027 = vmatprep.subr.mxu1 %v13045_v46 }
 0x6e7   :  { %v4863_v41 = vsub.f32 %v4861_v35, %v4862_v36 }
 0x6e9   :  { %11890 = vmatmul.mubr.f32.vlgmr.msra.gmra.mrb[6].mxu0 %v13382_v31 }
 0x6ea   :  { %11893 = vmatpush3.msra.mxu0 %v13338_v58  ;;  %11894 = vmatprep.mubr.msk.f32.mxu0 %vm13046_vm1, %v13045_v46  ;;  %v4374_v58 = vand.u32 4294901760, %v4373_v57 }
 0x6eb   :  { %11927 = vmatprep.subr.mxu0 %v4286_v56 }
 0x6ec   :  { %12025 = vmatmul.mubr.f32.vlgmr.msra.gmra.mrb[12].mxu1 %v5801_v42  ;;  %v4375_v59 = vsub.f32 %v4373_v57, %v4374_v58 }
 0x6ed   :  { %12028 = vmatpush3.xpose.msra.mxu1 %v5813_v45  ;;  %12029 = vmatprep.mubr.msk.f32.mxu1 %vm13046_vm1, %v13045_v46 }
 0x6ee   :  { %12032 = vmatprep.subr.mxu1 %v13045_v46  ;;  %v4376_v60 = vand.u32 4294901760, %v4375_v59 }
 0x6f1   :  { %11895 = vmatmul.mubr.f32.vlgmr.msra.gmra.mrb[6].mxu0 %v13382_v31 }
 0x6f2   :  { %11928 = vmatpush3.msra.mxu0 %v4286_v56 }
 0x6f3   :  { %11932 = vmatprep.subr.mxu0 %v4376_v60 }
 0x6f4   :  { %12030 = vmatmul.mubr.f32.vlgmr.msra.gmra.mrb[12].mxu1 %v5802_v44  ;;  %v4864_v44 = vand.u32 4294901760, %v4863_v41 }
 0x6f5   :  { %12033 = vmatpush3.xpose.msra.mxu1 %v5736_v43  ;;  %12034 = vmatprep.mubr.msk.f32.mxu1 %vm13046_vm1, %v13045_v46 }
 0x6f6   :  { %12037 = vmatprep.subr.mxu1 %v13045_v46 }
 0x6fc   :  { %12035 = vmatmul.mubr.f32.vlgmr.msra.gmra.mrb[12].mxu1 %v5803_v47 }
 0x6fd   :  { %12038 = vmatpush3.xpose.msra.mxu1 %v5814_v48  ;;  %12039 = vmatprep.mubr.msk.f32.mxu1 %vm13046_vm1, %v13045_v46 }
 0x6fe   :  { %12042 = vmatprep.subr.mxu1 %v13045_v46 }
 0x704   :  { %12040 = vmatmul.mubr.f32.vlgmr.msra.gmra.mrb[12].mxu1 %v5801_v42 }
 0x705   :  { %12043 = vmatpush3.xpose.msra.mxu1 %v5736_v43  ;;  %12044 = vmatprep.mubr.msk.f32.mxu1 %vm13046_vm1, %v13045_v46 }
 0x706   :  { %12077 = vmatprep.subr.mxu1 %v13045_v46 }
 0x70c   :  { %12045 = vmatmul.mubr.f32.vlgmr.msra.gmra.mrb[12].mxu1 %v5801_v42 }
 0x70d   :  { %12079 = vmatprep.mubr.msk.f32.mxu1 %vm13046_vm1, %v13045_v46 }
 0x787   :  { %v4271_v61 = vpop.f32.mrb[8].mxu1 }
 0x788   :  { %v11926_v62 = vpop.f32.mrb[9].mxu1  ;;  %v4283_v4 = vsel %vm607_vm2, %v4271_v61, 0 }
 0x789   :  { %v4361_v5 = vand.u32 4294901760, %v4283_v4 }
 0x78b   :  { %v4362_v6 = vsub.f32 %v4283_v4, %v4361_v5 }
 0x78d   :  { %v4363_v11 = vand.u32 4294901760, %v4362_v6 }
 0x78f   :  { %v4364_v13 = vsub.f32 %v4362_v6, %v4363_v11 }
 0x791   :  { %v4365_v16 = vand.u32 4294901760, %v4364_v13 }
 0x7b3   :  { %v5723_v63 = vpop.f32.mrb[10].mxu1 }
 0x7b4   :  { %v6181_v0 = vmul.f32 0.35355338, %v5723_v63  ;;  %v12016_v2 = vpop.f32.mrb[11].mxu1 }
 0x7b6   :  { %v6183_v3 = vsel %vm607_vm2, %v6181_v0, -inf }
 0x7b7   :  { %6184 = vmax.xlane.f32.xlu1 %v6183_v3 }
 0x7c4   :  { %v3819_v7 = vpop.f32.mrb[6].mxu0 }
 0x7c5   :  { %v4280_v8 = vsel %vm607_vm2, %v3819_v7, 0  ;;  %v11896_v9 = vpop.f32.mrb[7].mxu0 }
 0x7c6   :  { %v4351_v10 = vand.u32 4294901760, %v4280_v8 }
 0x7c8   :  { %v4352_v12 = vsub.f32 %v4280_v8, %v4351_v10 }
 0x7ca   :  { %v4353_v1 = vand.u32 4294901760, %v4352_v12 }
 0x7cc   :  { %v4354_v14 = vsub.f32 %v4352_v12, %v4353_v1 }
 0x7ce   :  { %v4355_v15 = vand.u32 4294901760, %v4354_v14 }
 0x7d0   :  { %11929 = vmatprep.mubr.f32.mxu0 %v4355_v15 }
 0x7d1   :  { %11930 = vmatmul.mubr.f32.vlgmr.msra.gmra.mrb[8].mxu0 %v4365_v16 }
 0x7d2   :  { %11934 = vmatprep.mubr.f32.mxu0 %v4351_v10  ;;  %11933 = vmatpush3.msra.mxu0 %v4376_v60 }
 0x7d3   :  { %11937 = vmatprep.subr.mxu0 %v4373_v57 }
 0x7d9   :  { %11935 = vmatmul.mubr.f32.vlgmr.msra.gmra.mrb[8].mxu0 %v4361_v5 }
 0x7da   :  { %11939 = vmatprep.mubr.f32.mxu0 %v4352_v12  ;;  %11938 = vmatpush3.msra.mxu0 %v4373_v57 }
 0x7db   :  { %11942 = vmatprep.subr.mxu0 %v4286_v56 }
 0x7df   :  { %v6177_v17 = vpop.f32.mrb[12].mxu1 }
 0x7e0   :  { %v6182_v18 = vmul.f32 0.35355338, %v6177_v17  ;;  %v12046_v19 = vpop.f32.mrb[13].mxu1 }
 0x7e1   :  { %11940 = vmatmul.mubr.f32.vlgmr.msra.gmra.mrb[8].mxu0 %v4362_v6 }
 0x7e2   :  { %11944 = vmatprep.mubr.f32.mxu0 %v4353_v1  ;;  %v6186_v20 = vsel %vm607_vm2, %v6182_v18, -inf  ;;  %11943 = vmatpush3.msra.mxu0 %v4286_v56 }
 0x7e3   :  { %6187 = vmax.xlane.f32.xlu1 %v6186_v20  ;;  %11947 = vmatprep.subr.mxu0 %v4374_v58 }
 0x7e9   :  { %11945 = vmatmul.mubr.f32.vlgmr.msra.gmra.mrb[8].mxu0 %v4363_v11 }
 0x7ea   :  { %11949 = vmatprep.mubr.f32.mxu0 %v4351_v10  ;;  %11948 = vmatpush3.msra.mxu0 %v4374_v58 }
 0x7eb   :  { %11952 = vmatprep.subr.mxu0 %v4286_v56 }
 0x7f1   :  { %11950 = vmatmul.mubr.f32.vlgmr.msra.gmra.mrb[8].mxu0 %v4361_v5 }
 0x7f2   :  { %11954 = vmatprep.mubr.f32.mxu0 %v4351_v10  ;;  %11953 = vmatpush3.msra.mxu0 %v4286_v56 }
 0x7f4   :  { %4775 = vrot.lane.b32.xlu1 %v12962_v26, %s13054_s20 }
 0x7f9   :  { %11955 = vmatmul.mubr.f32.vlgmr.msra.gmra.mrb[8].mxu0 %v4361_v5 }
 0x7fa   :  { %11959 = vmatprep.mubr.f32.mxu0 %v4854_v27 }
 0x844   :  { %v6185_v37 = vpop.xlane.xlu1 %6184 }
 0x845   :  { %v6189_v29 = vsub.f32 %v6181_v0, %v6185_v37 }
 0x847   :  { %v6191_v30 = vmul.f32 1.442695, %v6189_v29 }
 0x849   :  { %12938 = vpow2.f32 %v6191_v30 }
 0x853   :  { %v13451_v31 = vpop.eup %12938 }
 0x854   :  { %v6195_v32 = vsel %vm607_vm2, %v13451_v31, 0.0 }
 0x855   :  { %6196 = vadd.xlane.f32.xlu0 %v6195_v32 }
 0x86b   :  { %6205 = vrot.lane.b32.xlu0 %v13150_v50, %s13055_s21 }
 0x86f   :  { %7110 = vrot.lane.b32.xlu0 %v12963_v38, %s13054_s20 }
 0x870   :  { %v6188_v39 = vpop.xlane.xlu1 %6187 }
 0x871   :  { %v6190_v40 = vsub.f32 %v6182_v18, %v6188_v39 }
 0x873   :  { %v6193_v42 = vmul.f32 1.442695, %v6190_v40  ;;  %7610 = vrot.lane.b32.xlu0 %v13150_v50, %s13056_s24 }
 0x874   :  { %v4776_v43 = vpop.permute.xlu1 %4775 }
 0x875   :  { %12940 = vpow2.f32 %v6193_v42  ;;  %v4785_v28 = vand.u32 4294901760, %v4776_v43 }
 0x877   :  { %v4872_v45 = vsub.f32 %v4776_v43, %v4785_v28  ;;  %8064 = vrot.lane.b32.xlu0 %v13153_v51, %s13056_s24  ;;  %11957 = vmatprep.subr.mxu0 %v4785_v28 }
 0x878   :  { %11958 = vmatpush3.msra.mxu0 %v4785_v28 }
 0x879   :  { %11960 = vmatmul.mubr.f32.vlgmr.msra.gmra.mrb[8].mxu0 %v4864_v44  ;;  %v4873_v47 = vand.u32 4294901760, %v4872_v45 }
 0x87a   :  { %11964 = vmatprep.mubr.f32.mxu0 %v13447_v22 }
 0x87b   :  { %7612 = vrot.lane.b32.xlu0 %v13150_v50, %s13057_s25  ;;  %v4874_v48 = vsub.f32 %v4872_v45, %v4873_v47 }
 0x87d   :  { %v4875_v49 = vand.u32 4294901760, %v4874_v48 }
 0x87f   :  { %v13464_v52 = vpop.eup %12940  ;;  %11962 = vmatprep.subr.mxu0 %v4875_v49 }
 0x880   :  { %11963 = vmatpush3.msra.mxu0 %v4875_v49  ;;  %v6198_v53 = vsel %vm607_vm2, %v13464_v52, 0.0 }
 0x881   :  { %6199 = vadd.xlane.f32.xlu1 %v6198_v53  ;;  %11965 = vmatmul.mubr.f32.vlgmr.msra.gmra.mrb[8].mxu0 %v4860_v34 }
 0x882   :  { %11969 = vmatprep.mubr.f32.mxu0 %v4851_v23  ;;  %11967 = vmatprep.subr.mxu0 %v4872_v45 }
 0x883   :  { %11968 = vmatpush3.msra.mxu0 %v4872_v45 }
 0x884   :  { %11972 = vmatprep.subr.mxu0 %v4785_v28 }
 0x889   :  { %11970 = vmatmul.mubr.f32.vlgmr.msra.gmra.mrb[8].mxu0 %v4861_v35 }
 0x88a   :  { %11974 = vmatprep.mubr.f32.mxu0 %v4852_v24  ;;  %11973 = vmatpush3.msra.mxu0 %v4785_v28 }
 0x88b   :  { %11977 = vmatprep.subr.mxu0 %v4873_v47 }
 0x891   :  { %11975 = vmatmul.mubr.f32.vlgmr.msra.gmra.mrb[8].mxu0 %v4862_v36 }
 0x892   :  { %6657 = vrot.lane.b32.xlu1 %v13153_v51, %s13055_s21  ;;  %11979 = vmatprep.mubr.f32.mxu0 %v13447_v22 }
 0x893   :  { %11978 = vmatpush3.msra.mxu0 %v4873_v47 }
 0x894   :  { %11982 = vmatprep.subr.mxu0 %v4785_v28 }
 0x896   :  { %8066 = vrot.lane.b32.xlu1 %v13153_v51, %s13057_s25 }
 0x899   :  { %11980 = vmatmul.mubr.f32.vlgmr.msra.gmra.mrb[8].mxu0 %v4860_v34 }
 0x89a   :  { %11984 = vmatprep.mubr.f32.mxu0 %v13447_v22  ;;  %11983 = vmatpush3.msra.mxu0 %v4785_v28 }
 0x89b   :  { %12047 = vmatprep.subr.mxu0 %v13045_v46 }
 0x8a1   :  { %11985 = vmatmul.mubr.f32.vlgmr.msra.gmra.mrb[8].mxu0 %v4860_v34 }
 0x8a2   :  { %12049 = vmatprep.mubr.msk.f32.mxu0 %vm13046_vm1, %v13045_v46 }
 0x8e2   :  { %v6197_v54 = vpop.xlane.xlu0 %6196 }
 0x8e3   :  { %12942 = vrcp.f32 %v6197_v54 }
 0x8e6   :  { %v6206_v55 = vpop.permute.xlu0 %6205 }
 0x8e7   :  { %v6212_v56 = vand.u32 4294901760, %v6206_v55 }
 0x8e9   :  { %12048 = vmatpush3.msra.mxu0 %v6212_v56  ;;  %v6289_v59 = vsub.f32 %v6206_v55, %v6212_v56 }
 0x8ea   :  { %12052 = vmatprep.subr.mxu0 %v13045_v46  ;;  %v13492_v10 = vpop.permute.xlu0 %7110 }
 0x8eb   :  { %v6290_v62 = vand.u32 4294901760, %v6289_v59  ;;  %v13496_v1 = vand.u32 4294901760, %v13492_v10 }
 0x8ed   :  { %v12943_v57 = vpop.eup %12942  ;;  %v6291_v2 = vsub.f32 %v6289_v59, %v6290_v62  ;;  %v7207_v38 = vsub.f32 %v13492_v10, %v13496_v1 }
 0x8ee   :  { %v6202_v58 = vmul.f32 %v12943_v57, %v13451_v31  ;;  %v7611_v22 = vpop.permute.xlu0 %7610 }
 0x8ef   :  { %v6292_v5 = vand.u32 4294901760, %v6291_v2  ;;  %v7614_v25 = vsel %vm607_vm2, %v7611_v22, 0  ;;  %v7208_v39 = vand.u32 4294901760, %v7207_v38  ;;  %v12964_v22 = vld [vmem:[#allocation5 + $0x30] sm:$0xff] }
 0x8f0   :  { %v6209_v60 = vsel %vm607_vm2, %v6202_v58, 0  ;;  %v7684_v27 = vand.u32 4294901760, %v7614_v25 }
 0x8f1   :  { %v6277_v61 = vand.u32 4294901760, %v6209_v60  ;;  %v7209_v40 = vsub.f32 %v7207_v38, %v7208_v39 }
 0x8f2   :  { %v13509_v23 = vpop.permute.xlu0 %8064  ;;  %v7685_v29 = vsub.f32 %v7614_v25, %v7684_v27 }
 0x8f3   :  { %v6278_v63 = vsub.f32 %v6209_v60, %v6277_v61  ;;  %v7210_v41 = vand.u32 4294901760, %v7209_v40 }
 0x8f4   :  { %v7686_v31 = vand.u32 4294901760, %v7685_v29 }
 0x8f5   :  { %v6279_v0 = vand.u32 4294901760, %v6278_v63 }
 0x8f6   :  { %v7613_v24 = vpop.permute.xlu0 %7612  ;;  %v7687_v33 = vsub.f32 %v7685_v29, %v7686_v31 }
 0x8f7   :  { %v6280_v3 = vsub.f32 %v6278_v63, %v6279_v0  ;;  %v7616_v26 = vsel %vm607_vm2, %v7613_v24, 0 }
 0x8f8   :  { %v7619_v37 = vand.u32 4294901760, %v7616_v26  ;;  %v7688_v35 = vand.u32 4294901760, %v7687_v33 }
 0x8f9   :  { %v6281_v4 = vand.u32 4294901760, %v6280_v3 }
 0x8fa   :  { %v7696_v30 = vsub.f32 %v7616_v26, %v7619_v37 }
 0x8fb   :  { %12050 = vmatmul.mubr.f32.vlgmr.msra.gmra.mrb[10].mxu0 %v6281_v4 }
 0x8fc   :  { %12053 = vmatpush3.msra.mxu0 %v6292_v5  ;;  %12054 = vmatprep.mubr.msk.f32.mxu0 %vm13046_vm1, %v13045_v46  ;;  %v7697_v32 = vand.u32 4294901760, %v7696_v30 }
 0x8fd   :  { %12057 = vmatprep.subr.mxu0 %v13045_v46 }
 0x8fe   :  { %v7698_v34 = vsub.f32 %v7696_v30, %v7697_v32 }
 0x900   :  { %v7699_v36 = vand.u32 4294901760, %v7698_v34 }
 0x903   :  { %12055 = vmatmul.mubr.f32.vlgmr.msra.gmra.mrb[10].mxu0 %v6277_v61 }
 0x904   :  { %12058 = vmatpush3.msra.mxu0 %v6289_v59  ;;  %12059 = vmatprep.mubr.msk.f32.mxu0 %vm13046_vm1, %v13045_v46 }
 0x905   :  { %12062 = vmatprep.subr.mxu0 %v13045_v46 }
 0x90b   :  { %12060 = vmatmul.mubr.f32.vlgmr.msra.gmra.mrb[10].mxu0 %v6278_v63 }
 0x90c   :  { %12063 = vmatpush3.msra.mxu0 %v6212_v56  ;;  %12064 = vmatprep.mubr.msk.f32.mxu0 %vm13046_vm1, %v13045_v46 }
 0x90d   :  { %12067 = vmatprep.subr.mxu0 %v13045_v46 }
 0x90e   :  { %v6200_v6 = vpop.xlane.xlu1 %6199 }
 0x90f   :  { %12944 = vrcp.f32 %v6200_v6 }
 0x912   :  { %v6658_v7 = vpop.permute.xlu1 %6657 }
 0x913   :  { %v6664_v8 = vand.u32 4294901760, %v6658_v7  ;;  %12065 = vmatmul.mubr.f32.vlgmr.msra.gmra.mrb[10].mxu0 %v6279_v0 }
 0x914   :  { %12068 = vmatpush3.msra.mxu0 %v6290_v62  ;;  %12069 = vmatprep.mubr.msk.f32.mxu0 %vm13046_vm1, %v13045_v46 }
 0x915   :  { %12078 = vmatpush3.msra.mxu1 %v6664_v8  ;;  %12072 = vmatprep.subr.mxu0 %v13045_v46  ;;  %v6741_v12 = vsub.f32 %v6658_v7, %v6664_v8 }
 0x916   :  { %12082 = vmatprep.subr.mxu1 %v13045_v46  ;;  %v8067_v60 = vpop.permute.xlu1 %8066 }
 0x917   :  { %v6742_v15 = vand.u32 4294901760, %v6741_v12  ;;  %v8070_v62 = vsel %vm607_vm2, %v8067_v60, 0 }
 0x918   :  { %v8073_v0 = vand.u32 4294901760, %v8070_v62 }
 0x919   :  { %v12945_v9 = vpop.eup %12944  ;;  %v6743_v18 = vsub.f32 %v6741_v12, %v6742_v15 }
 0x91a   :  { %v6204_v11 = vmul.f32 %v12945_v9, %v13464_v52  ;;  %v8150_v3 = vsub.f32 %v8070_v62, %v8073_v0 }
 0x91b   :  { %12070 = vmatmul.mubr.f32.vlgmr.msra.gmra.mrb[10].mxu0 %v6277_v61  ;;  %v6744_v21 = vand.u32 4294901760, %v6743_v18 }
 0x91c   :  { %12073 = vmatpush3.msra.mxu0 %v6212_v56  ;;  %12074 = vmatprep.mubr.msk.f32.mxu0 %vm13046_vm1, %v13045_v46  ;;  %v6661_v13 = vsel %vm607_vm2, %v6204_v11, 0 }
 0x91d   :  { %v6729_v14 = vand.u32 4294901760, %v6661_v13  ;;  %12107 = vmatprep.subr.mxu0 %v13496_v1 }
 0x91f   :  { %v6730_v16 = vsub.f32 %v6661_v13, %v6729_v14 }
 0x921   :  { %v6731_v17 = vand.u32 4294901760, %v6730_v16 }
 0x923   :  { %12075 = vmatmul.mubr.f32.vlgmr.msra.gmra.mrb[10].mxu0 %v6277_v61  ;;  %v6732_v19 = vsub.f32 %v6730_v16, %v6731_v17  ;;  %v8068_v61 = vsel %vm607_vm2, %v13509_v23, 0 }
 0x924   :  { %12108 = vmatpush3.msra.mxu0 %v13496_v1  ;;  %v8138_v63 = vand.u32 4294901760, %v8068_v61 }
 0x925   :  { %v6733_v20 = vand.u32 4294901760, %v6732_v19  ;;  %12112 = vmatprep.subr.mxu0 %v7210_v41 }
 0x926   :  { %v8139_v2 = vsub.f32 %v8068_v61, %v8138_v63 }
 0x927   :  { %12080 = vmatmul.mubr.f32.vlgmr.msra.gmra.mrb[14].mxu1 %v6733_v20 }
 0x928   :  { %12083 = vmatpush3.msra.mxu1 %v6744_v21  ;;  %12084 = vmatprep.mubr.msk.f32.mxu1 %vm13046_vm1, %v13045_v46  ;;  %v8140_v7 = vand.u32 4294901760, %v8139_v2 }
 0x929   :  { %12087 = vmatprep.subr.mxu1 %v13045_v46 }
 0x92a   :  { %v8141_v10 = vsub.f32 %v8139_v2, %v8140_v7 }
 0x92f   :  { %12085 = vmatmul.mubr.f32.vlgmr.msra.gmra.mrb[14].mxu1 %v6729_v14 }
 0x930   :  { %12088 = vmatpush3.msra.mxu1 %v6741_v12  ;;  %12089 = vmatprep.mubr.msk.f32.mxu1 %vm13046_vm1, %v13045_v46  ;;  %v8142_v12 = vand.u32 4294901760, %v8141_v10 }
 0x931   :  { %12092 = vmatprep.subr.mxu1 %v13045_v46 }
 0x937   :  { %12090 = vmatmul.mubr.f32.vlgmr.msra.gmra.mrb[14].mxu1 %v6730_v16 }
 0x938   :  { %12093 = vmatpush3.msra.mxu1 %v6664_v8  ;;  %12094 = vmatprep.mubr.msk.f32.mxu1 %vm13046_vm1, %v13045_v46 }
 0x939   :  { %12097 = vmatprep.subr.mxu1 %v13045_v46 }
 0x93f   :  { %12095 = vmatmul.mubr.f32.vlgmr.msra.gmra.mrb[14].mxu1 %v6731_v17 }
 0x940   :  { %12098 = vmatpush3.msra.mxu1 %v6742_v15  ;;  %12099 = vmatprep.mubr.msk.f32.mxu1 %vm13046_vm1, %v13045_v46 }
 0x941   :  { %12102 = vmatprep.subr.mxu1 %v13045_v46 }
 0x947   :  { %12100 = vmatmul.mubr.f32.vlgmr.msra.gmra.mrb[14].mxu1 %v6729_v14 }
 0x948   :  { %12103 = vmatpush3.msra.mxu1 %v6664_v8  ;;  %12104 = vmatprep.mubr.msk.f32.mxu1 %vm13046_vm1, %v13045_v46  ;;  %v8151_v8 = vand.u32 4294901760, %v8150_v3 }
 0x949   :  { %12137 = vmatprep.subr.mxu1 %v13045_v46 }
 0x94a   :  { %v8152_v11 = vsub.f32 %v8150_v3, %v8151_v8 }
 0x94f   :  { %12105 = vmatmul.mubr.f32.vlgmr.msra.gmra.mrb[14].mxu1 %v6729_v14 }
 0x950   :  { %12138 = vmatpush3.xpose.msra.mxu1 %v7619_v37  ;;  %12139 = vmatprep.mubr.msk.f32.mxu1 %vm13046_vm1, %v13045_v46 }
 0x951   :  { %12142 = vmatprep.subr.mxu1 %v13045_v46 }
 0x953   :  { %12140 = vmatmul.mubr.f32.vlgmr.msra.gmra.mrb[16].mxu1 %v7688_v35 }
 0x954   :  { %12143 = vmatpush3.xpose.msra.mxu1 %v7699_v36  ;;  %12144 = vmatprep.mubr.msk.f32.mxu1 %vm13046_vm1, %v13045_v46 }
 0x955   :  { %12147 = vmatprep.subr.mxu1 %v13045_v46 }
 0x95b   :  { %12145 = vmatmul.mubr.f32.vlgmr.msra.gmra.mrb[16].mxu1 %v7684_v27 }
 0x95c   :  { %12148 = vmatpush3.xpose.msra.mxu1 %v7696_v30  ;;  %12149 = vmatprep.mubr.msk.f32.mxu1 %vm13046_vm1, %v13045_v46 }
 0x95d   :  { %12152 = vmatprep.subr.mxu1 %v13045_v46 }
 0x963   :  { %12150 = vmatmul.mubr.f32.vlgmr.msra.gmra.mrb[16].mxu1 %v7685_v29 }
 0x964   :  { %12153 = vmatpush3.xpose.msra.mxu1 %v7619_v37  ;;  %12154 = vmatprep.mubr.msk.f32.mxu1 %vm13046_vm1, %v13045_v46 }
 0x965   :  { %12157 = vmatprep.subr.mxu1 %v13045_v46 }
 0x96b   :  { %12155 = vmatmul.mubr.f32.vlgmr.msra.gmra.mrb[16].mxu1 %v7686_v31 }
 0x96c   :  { %12158 = vmatpush3.xpose.msra.mxu1 %v7697_v32  ;;  %12159 = vmatprep.mubr.msk.f32.mxu1 %vm13046_vm1, %v13045_v46 }
 0x96d   :  { %12162 = vmatprep.subr.mxu1 %v13045_v46 }
 0x973   :  { %12160 = vmatmul.mubr.f32.vlgmr.msra.gmra.mrb[16].mxu1 %v7684_v27 }
 0x974   :  { %12163 = vmatpush3.xpose.msra.mxu1 %v7619_v37  ;;  %12164 = vmatprep.mubr.msk.f32.mxu1 %vm13046_vm1, %v13045_v46 }
 0x975   :  { %12197 = vmatprep.subr.mxu1 %v13045_v46 }
 0x97b   :  { %12165 = vmatmul.mubr.f32.vlgmr.msra.gmra.mrb[16].mxu1 %v7684_v27 }
 0x97c   :  { %12199 = vmatprep.mubr.msk.f32.mxu1 %vm13046_vm1, %v13045_v46 }
 0x9f6   :  { %v6653_v42 = vpop.f32.mrb[10].mxu0 }
 0x9f7   :  { %v7114_v43 = vsel %vm607_vm2, %v6653_v42, 0  ;;  %v12076_v28 = vpop.f32.mrb[11].mxu0 }
 0x9f8   :  { %v7185_v44 = vand.u32 4294901760, %v7114_v43 }
 0x9fa   :  { %v7186_v45 = vsub.f32 %v7114_v43, %v7185_v44 }
 0x9fc   :  { %v7187_v47 = vand.u32 4294901760, %v7186_v45 }
 0x9fe   :  { %v7188_v48 = vsub.f32 %v7186_v45, %v7187_v47 }
 0xa00   :  { %v7189_v49 = vand.u32 4294901760, %v7188_v48 }
 0xa02   :  { %12109 = vmatprep.mubr.f32.mxu0 %v7189_v49 }
 0xa22   :  { %v7105_v52 = vpop.f32.mrb[14].mxu1 }
 0xa23   :  { %v7117_v53 = vsel %vm607_vm2, %v7105_v52, 0  ;;  %v12106_v54 = vpop.f32.mrb[15].mxu1 }
 0xa24   :  { %v7195_v55 = vand.u32 4294901760, %v7117_v53 }
 0xa26   :  { %v7196_v56 = vsub.f32 %v7117_v53, %v7195_v55 }
 0xa28   :  { %v7197_v57 = vand.u32 4294901760, %v7196_v56 }
 0xa2a   :  { %v7198_v58 = vsub.f32 %v7196_v56, %v7197_v57 }
 0xa2c   :  { %v7199_v59 = vand.u32 4294901760, %v7198_v58 }
 0xa2e   :  { %12110 = vmatmul.mubr.f32.vlgmr.msra.gmra.mrb[8].mxu0 %v7199_v59 }
 0xa2f   :  { %12113 = vmatpush3.msra.mxu0 %v7210_v41  ;;  %12114 = vmatprep.mubr.f32.mxu0 %v7185_v44 }
 0xa30   :  { %12117 = vmatprep.subr.mxu0 %v7207_v38 }
 0xa36   :  { %12115 = vmatmul.mubr.f32.vlgmr.msra.gmra.mrb[8].mxu0 %v7195_v55 }
 0xa37   :  { %12118 = vmatpush3.msra.mxu0 %v7207_v38  ;;  %12119 = vmatprep.mubr.f32.mxu0 %v7186_v45 }
 0xa38   :  { %12122 = vmatprep.subr.mxu0 %v13496_v1 }
 0xa3e   :  { %12120 = vmatmul.mubr.f32.vlgmr.msra.gmra.mrb[8].mxu0 %v7196_v56 }
 0xa3f   :  { %12123 = vmatpush3.msra.mxu0 %v13496_v1  ;;  %12124 = vmatprep.mubr.f32.mxu0 %v7187_v47 }
 0xa40   :  { %12127 = vmatprep.subr.mxu0 %v7208_v39 }
 0xa46   :  { %12125 = vmatmul.mubr.f32.vlgmr.msra.gmra.mrb[8].mxu0 %v7197_v57 }
 0xa47   :  { %12128 = vmatpush3.msra.mxu0 %v7208_v39  ;;  %12129 = vmatprep.mubr.f32.mxu0 %v7185_v44 }
 0xa48   :  { %12132 = vmatprep.subr.mxu0 %v13496_v1 }
 0xa4e   :  { %12130 = vmatmul.mubr.f32.vlgmr.msra.gmra.mrb[8].mxu0 %v7195_v55  ;;  %v8060_v4 = vpop.f32.mrb[16].mxu1 }
 0xa4f   :  { %12133 = vmatpush3.msra.mxu0 %v13496_v1  ;;  %v8518_v5 = vmul.f32 0.35355338, %v8060_v4  ;;  %12134 = vmatprep.mubr.f32.mxu0 %v7185_v44  ;;  %v12166_v6 = vpop.f32.mrb[17].mxu1  ;;  %v8153_v1 = vand.u32 4294901760, %v8152_v11 }
 0xa50   :  { %12167 = vmatprep.subr.mxu0 %v13045_v46 }
 0xa51   :  { %v8520_v9 = vsel %vm607_vm2, %v8518_v5, -inf }
 0xa52   :  { %8521 = vmax.xlane.f32.xlu0 %v8520_v9 }
 0xa56   :  { %12135 = vmatmul.mubr.f32.vlgmr.msra.gmra.mrb[8].mxu0 %v7195_v55 }
 0xa57   :  { %12168 = vmatpush3.xpose.msra.mxu0 %v8073_v0  ;;  %12169 = vmatprep.mubr.msk.f32.mxu0 %vm13046_vm1, %v13045_v46 }
 0xa58   :  { %12172 = vmatprep.subr.mxu0 %v13045_v46 }
 0xa5a   :  { %12170 = vmatmul.mubr.f32.vlgmr.msra.gmra.mrb[12].mxu0 %v8142_v12 }
 0xa5b   :  { %12173 = vmatpush3.xpose.msra.mxu0 %v8153_v1  ;;  %12174 = vmatprep.mubr.msk.f32.mxu0 %vm13046_vm1, %v13045_v46 }
 0xa5c   :  { %12177 = vmatprep.subr.mxu0 %v13045_v46 }
 0xa62   :  { %12175 = vmatmul.mubr.f32.vlgmr.msra.gmra.mrb[12].mxu0 %v8138_v63 }
 0xa63   :  { %12178 = vmatpush3.xpose.msra.mxu0 %v8150_v3  ;;  %12179 = vmatprep.mubr.msk.f32.mxu0 %vm13046_vm1, %v13045_v46 }
 0xa64   :  { %12182 = vmatprep.subr.mxu0 %v13045_v46 }
 0xa6a   :  { %12180 = vmatmul.mubr.f32.vlgmr.msra.gmra.mrb[12].mxu0 %v8139_v2 }
 0xa6b   :  { %12183 = vmatpush3.xpose.msra.mxu0 %v8073_v0  ;;  %12184 = vmatprep.mubr.msk.f32.mxu0 %vm13046_vm1, %v13045_v46 }
 0xa6c   :  { %12187 = vmatprep.subr.mxu0 %v13045_v46 }
 0xa72   :  { %12185 = vmatmul.mubr.f32.vlgmr.msra.gmra.mrb[12].mxu0 %v8140_v7 }
 0xa73   :  { %12188 = vmatpush3.xpose.msra.mxu0 %v8151_v8  ;;  %12189 = vmatprep.mubr.msk.f32.mxu0 %vm13046_vm1, %v13045_v46 }
 0xa74   :  { %12192 = vmatprep.subr.mxu0 %v13045_v46 }
 0xa7a   :  { %12190 = vmatmul.mubr.f32.vlgmr.msra.gmra.mrb[12].mxu0 %v8138_v63 }
 0xa7b   :  { %12193 = vmatpush3.xpose.msra.mxu0 %v8073_v0  ;;  %12194 = vmatprep.mubr.msk.f32.mxu0 %vm13046_vm1, %v13045_v46 }
 0xa7c   :  { %12227 = vmatprep.subr.mxu0 %v13045_v46 }
 0xa82   :  { %12195 = vmatmul.mubr.f32.vlgmr.msra.gmra.mrb[12].mxu0 %v8138_v63 }
 0xa83   :  { %12229 = vmatprep.mubr.msk.f32.mxu0 %vm13046_vm1, %v13045_v46 }
 0xadf   :  { %v8522_v13 = vpop.xlane.xlu0 %8521 }
 0xae0   :  { %v8526_v14 = vsub.f32 %v8518_v5, %v8522_v13 }
 0xae2   :  { %v8528_v15 = vmul.f32 1.442695, %v8526_v14 }
 0xae4   :  { %12946 = vpow2.f32 %v8528_v15 }
 0xaee   :  { %v12947_v16 = vpop.eup %12946 }
 0xaef   :  { %v8532_v17 = vsel %vm607_vm2, %v12947_v16, 0.0 }
 0xaf0   :  { %8533 = vadd.xlane.f32.xlu0 %v8532_v17 }
 0xb55   :  { %v8514_v18 = vpop.f32.mrb[12].mxu0 }
 0xb56   :  { %v8519_v19 = vmul.f32 0.35355338, %v8514_v18  ;;  %v12196_v20 = vpop.f32.mrb[13].mxu0 }
 0xb58   :  { %v8523_v21 = vsel %vm607_vm2, %v8519_v19, -inf }
 0xb59   :  { %8524 = vmax.xlane.f32.xlu1 %v8523_v21  ;;  %v12965_v21 = vld [vmem:[#allocation2 + $0x8] sm:$0xff] }
 0xb6a   :  { %8542 = vrot.lane.b32.xlu1 %v13150_v50, %s13058_s26 }
 0xb6e   :  { %9447 = vrot.lane.b32.xlu1 %v12964_v22, %s13054_s20 }
 0xb7d   :  { %v8534_v23 = vpop.xlane.xlu0 %8533 }
 0xb7e   :  { %12948 = vrcp.f32 %v8534_v23  ;;  %v12966_v23 = vld [vmem:[#allocation2] sm:$0xff] }
 0xb88   :  { %v12949_v24 = vpop.eup %12948 }
 0xb89   :  { %v8539_v25 = vmul.f32 %v12949_v24, %v12947_v16  ;;  %v11218_v16 = vld [vmem:[%s13801_s2 + $0x1] ss:$0 sm:$0xff] }
 0xb8b   :  { %v8546_v26 = vsel %vm607_vm2, %v8539_v25, 0 }
 0xb8c   :  { %v8614_v27 = vand.u32 4294901760, %v8546_v26 }
 0xb8e   :  { %v8615_v37 = vsub.f32 %v8546_v26, %v8614_v27 }
 0xb90   :  { %v8616_v29 = vand.u32 4294901760, %v8615_v37 }
 0xb92   :  { %v8617_v32 = vsub.f32 %v8615_v37, %v8616_v29 }
 0xb94   :  { %v8618_v50 = vand.u32 4294901760, %v8617_v32 }
 0xbe6   :  { %v8525_v30 = vpop.xlane.xlu1 %8524 }
 0xbe7   :  { %v8527_v31 = vsub.f32 %v8519_v19, %v8525_v30 }
 0xbe9   :  { %v8530_v33 = vmul.f32 1.442695, %v8527_v31 }
 0xbea   :  { %v8543_v34 = vpop.permute.xlu1 %8542 }
 0xbeb   :  { %12950 = vpow2.f32 %v8530_v33  ;;  %v8549_v35 = vand.u32 4294901760, %v8543_v34 }
 0xbed   :  { %v8626_v36 = vsub.f32 %v8543_v34, %v8549_v35  ;;  %12198 = vmatpush3.msra.mxu1 %v8549_v35 }
 0xbee   :  { %12200 = vmatmul.mubr.f32.vlgmr.msra.gmra.mrb[18].mxu1 %v8618_v50  ;;  %12202 = vmatprep.subr.mxu1 %v13045_v46  ;;  %v9448_v59 = vpop.permute.xlu1 %9447 }
 0xbef   :  { %v8627_v38 = vand.u32 4294901760, %v8626_v36  ;;  %12204 = vmatprep.mubr.msk.f32.mxu1 %vm13046_vm1, %v13045_v46  ;;  %v9457_v60 = vand.u32 4294901760, %v9448_v59 }
 0xbf1   :  { %v8628_v39 = vsub.f32 %v8626_v36, %v8627_v38  ;;  %v9544_v6 = vsub.f32 %v9448_v59, %v9457_v60 }
 0xbf3   :  { %v8629_v40 = vand.u32 4294901760, %v8628_v39  ;;  %v9545_v7 = vand.u32 4294901760, %v9544_v6  ;;  %v51_v39 = vld [vmem:[#allocation5 + $0x28] sm:$0xff] }
 0xbf5   :  { %v12951_v41 = vpop.eup %12950  ;;  %12203 = vmatpush3.msra.mxu1 %v8629_v40  ;;  %v9546_v8 = vsub.f32 %v9544_v6, %v9545_v7 }
 0xbf6   :  { %12205 = vmatmul.mubr.f32.vlgmr.msra.gmra.mrb[18].mxu1 %v8614_v27  ;;  %12207 = vmatprep.subr.mxu1 %v13045_v46  ;;  %v8535_v42 = vsel %vm607_vm2, %v12951_v41, 0.0 }
 0xbf7   :  { %8536 = vadd.xlane.f32.xlu0 %v8535_v42  ;;  %12208 = vmatpush3.msra.mxu1 %v8626_v36  ;;  %v9547_v9 = vand.u32 4294901760, %v9546_v8  ;;  %v49_v36 = vld [vmem:[#allocation5 + $0x8] sm:$0xff]  ;;  %v52_v42 = vld [vmem:[#allocation5 + $0x38] sm:$0xff] }
 0xbf8   :  { %12209 = vmatprep.mubr.msk.f32.mxu1 %vm13046_vm1, %v13045_v46  ;;  %12212 = vmatprep.subr.mxu1 %v13045_v46  ;;  %v10005_v40 = vand.u32 4294901760, %v49_v36  ;;  %v54_v8 = vld [vmem:[#allocation5 + $0x58] sm:$0xff] }
 0xbfe   :  { %12210 = vmatmul.mubr.f32.vlgmr.msra.gmra.mrb[18].mxu1 %v8615_v37 }
 0xbff   :  { %12213 = vmatpush3.msra.mxu1 %v8549_v35  ;;  %12214 = vmatprep.mubr.msk.f32.mxu1 %vm13046_vm1, %v13045_v46 }
 0xc00   :  { %12217 = vmatprep.subr.mxu1 %v13045_v46 }
 0xc06   :  { %12215 = vmatmul.mubr.f32.vlgmr.msra.gmra.mrb[18].mxu1 %v8616_v29 }
 0xc07   :  { %12218 = vmatpush3.msra.mxu1 %v8627_v38  ;;  %12219 = vmatprep.mubr.msk.f32.mxu1 %vm13046_vm1, %v13045_v46  ;;  %v50_v38 = vld [vmem:[#allocation5 + $0x18] sm:$0xff] }
 0xc08   :  { %12222 = vmatprep.subr.mxu1 %v13045_v46 }
 0xc0d   :  { %8994 = vrot.lane.b32.xlu0 %v13153_v51, %s13058_s26 }
 0xc0e   :  { %12220 = vmatmul.mubr.f32.vlgmr.msra.gmra.mrb[18].mxu1 %v8614_v27 }
 0xc0f   :  { %12223 = vmatpush3.msra.mxu1 %v8549_v35  ;;  %12224 = vmatprep.mubr.msk.f32.mxu1 %vm13046_vm1, %v13045_v46 }
 0xc16   :  { %12225 = vmatmul.mubr.f32.vlgmr.msra.gmra.mrb[18].mxu1 %v8614_v27 }
 0xc84   :  { %v8537_v43 = vpop.xlane.xlu0 %8536 }
 0xc85   :  { %12952 = vrcp.f32 %v8537_v43  ;;  %v10011_v43 = vand.u32 4294901760, %v51_v39 }
 0xc88   :  { %v8995_v28 = vpop.permute.xlu0 %8994 }
 0xc89   :  { %v9001_v44 = vand.u32 4294901760, %v8995_v28 }
 0xc8b   :  { %12228 = vmatpush3.msra.mxu0 %v9001_v44  ;;  %v9078_v48 = vsub.f32 %v8995_v28, %v9001_v44  ;;  %v10014_v28 = vand.u32 4294901760, %v52_v42 }
 0xc8c   :  { %12232 = vmatprep.subr.mxu0 %v13045_v46 }
 0xc8d   :  { %v9079_v51 = vand.u32 4294901760, %v9078_v48 }
 0xc8f   :  { %v12953_v45 = vpop.eup %12952  ;;  %v9080_v55 = vsub.f32 %v9078_v48, %v9079_v51 }
 0xc90   :  { %v8541_v47 = vmul.f32 %v12953_v45, %v12951_v41  ;;  %v10008_v41 = vand.u32 4294901760, %v50_v38  ;;  %v13636_v45 = vpack.c.bf16 %v10014_v28, %v10011_v43 }
 0xc91   :  { %v9081_v58 = vand.u32 4294901760, %v9080_v55  ;;  %v10116_v55 = vsub.f32 %v52_v42, %v10014_v28 }
 0xc92   :  { %v8998_v49 = vsel %vm607_vm2, %v8541_v47, 0  ;;  %v10095_v47 = vsub.f32 %v49_v36, %v10005_v40 }
 0xc93   :  { %v9066_v52 = vand.u32 4294901760, %v8998_v49  ;;  %v10117_v59 = vand.u32 4294901760, %v10116_v55 }
 0xc95   :  { %v9067_v53 = vsub.f32 %v8998_v49, %v9066_v52  ;;  %v10096_v49 = vand.u32 4294901760, %v10095_v47 }
 0xc97   :  { %v9068_v54 = vand.u32 4294901760, %v9067_v53 }
 0xc99   :  { %v9069_v56 = vsub.f32 %v9067_v53, %v9068_v54 }
 0xc9b   :  { %v9070_v57 = vand.u32 4294901760, %v9069_v56 }
 0xc9d   :  { %12230 = vmatmul.mubr.f32.vlgmr.msra.gmra.mrb[14].mxu0 %v9070_v57 }
 0xc9e   :  { %12233 = vmatpush3.msra.mxu0 %v9081_v58  ;;  %12234 = vmatprep.mubr.msk.f32.mxu0 %vm13046_vm1, %v13045_v46 }
 0xc9f   :  { %12237 = vmatprep.subr.mxu0 %v13045_v46 }
 0xca5   :  { %12235 = vmatmul.mubr.f32.vlgmr.msra.gmra.mrb[14].mxu0 %v9066_v52 }
 0xca6   :  { %12238 = vmatpush3.msra.mxu0 %v9078_v48  ;;  %12239 = vmatprep.mubr.msk.f32.mxu0 %vm13046_vm1, %v13045_v46  ;;  %v10102_v48 = vsub.f32 %v50_v38, %v10008_v41 }
 0xca7   :  { %12242 = vmatprep.subr.mxu0 %v13045_v46 }
 0xcad   :  { %12240 = vmatmul.mubr.f32.vlgmr.msra.gmra.mrb[14].mxu0 %v9067_v53 }
 0xcae   :  { %12243 = vmatpush3.msra.mxu0 %v9001_v44  ;;  %12244 = vmatprep.mubr.msk.f32.mxu0 %vm13046_vm1, %v13045_v46 }
 0xcaf   :  { %12247 = vmatprep.subr.mxu0 %v13045_v46 }
 0xcb5   :  { %12245 = vmatmul.mubr.f32.vlgmr.msra.gmra.mrb[14].mxu0 %v9068_v54  ;;  %v10109_v54 = vsub.f32 %v51_v39, %v10011_v43 }
 0xcb6   :  { %12248 = vmatpush3.msra.mxu0 %v9079_v51  ;;  %12249 = vmatprep.mubr.msk.f32.mxu0 %vm13046_vm1, %v13045_v46  ;;  %v10097_v51 = vsub.f32 %v10095_v47, %v10096_v49 }
 0xcb7   :  { %12252 = vmatprep.subr.mxu0 %v13045_v46  ;;  %v10110_v58 = vand.u32 4294901760, %v10109_v54 }
 0xcb8   :  { %v10098_v56 = vand.u32 4294901760, %v10097_v51 }
 0xcbd   :  { %12250 = vmatmul.mubr.f32.vlgmr.msra.gmra.mrb[14].mxu0 %v9066_v52 }
 0xcbe   :  { %12253 = vmatpush3.msra.mxu0 %v9001_v44  ;;  %12254 = vmatprep.mubr.msk.f32.mxu0 %vm13046_vm1, %v13045_v46  ;;  %v13634_v44 = vpack.c.bf16 %v10008_v41, %v10005_v40 }
 0xcbf   :  { %12257 = vmatprep.subr.mxu0 %v9457_v60 }
 0xcc0   :  { %12516 = vmatprep.subr.bf16.mxu1 %v13634_v44 }
 0xcc1   :  { %12518 = vmatpush3.bf16.msra.mxu1 %v13634_v44 }
 0xcc2   :  { %12520 = vmatprep.subr.bf16.mxu1 %v13636_v45 }
 0xcc5   :  { %12255 = vmatmul.mubr.f32.vlgmr.msra.gmra.mrb[14].mxu0 %v9066_v52  ;;  %12522 = vmatpush3.bf16.msra.mxu1 %v13636_v45  ;;  %v10103_v52 = vand.u32 4294901760, %v10102_v48 }
 0xcc6   :  { %12258 = vmatpush3.msra.mxu0 %v9457_v60 }
 0xcc7   :  { %12262 = vmatprep.subr.mxu0 %v9547_v9  ;;  %v10104_v53 = vsub.f32 %v10102_v48, %v10103_v52 }
 0xcc9   :  { %v10105_v57 = vand.u32 4294901760, %v10104_v53 }
 0xce9   :  { %v8990_v61 = vpop.f32.mrb[18].mxu1 }
 0xcea   :  { %v9451_v62 = vsel %vm607_vm2, %v8990_v61, 0  ;;  %v12226_v63 = vpop.f32.mrb[19].mxu1  ;;  %v10111_v61 = vsub.f32 %v10109_v54, %v10110_v58 }
 0xceb   :  { %v9522_v0 = vand.u32 4294901760, %v9451_v62 }
 0xcec   :  { %v10112_v63 = vand.u32 4294901760, %v10111_v61 }
 0xced   :  { %v9523_v2 = vsub.f32 %v9451_v62, %v9522_v0  ;;  %v10118_v62 = vsub.f32 %v10116_v55, %v10117_v59 }
 0xcef   :  { %v9524_v3 = vand.u32 4294901760, %v9523_v2 }
 0xcf1   :  { %v9525_v4 = vsub.f32 %v9523_v2, %v9524_v3 }
 0xcf3   :  { %v9526_v5 = vand.u32 4294901760, %v9525_v4  ;;  %v13651_v4 = vpack.c.bf16 %v10116_v55, %v10109_v54 }
 0xcf5   :  { %12259 = vmatprep.mubr.f32.mxu0 %v9526_v5  ;;  %v13653_v5 = vpack.c.bf16 %v10103_v52, %v10096_v49 }
 0xd98   :  { %v9442_v10 = vpop.f32.mrb[14].mxu0 }
 0xd99   :  { %v9454_v46 = vsel %vm607_vm2, %v9442_v10, 0  ;;  %v12256_v11 = vpop.f32.mrb[15].mxu0  ;;  %v56_v10 = vld [vmem:[#allocation5 + $0x78] sm:$0xff] }
 0xd9a   :  { %v9532_v12 = vand.u32 4294901760, %v9454_v46 }
 0xd9c   :  { %v9533_v1 = vsub.f32 %v9454_v46, %v9532_v12 }
 0xd9e   :  { %v9534_v13 = vand.u32 4294901760, %v9533_v1 }
 0xda0   :  { %v9535_v14 = vsub.f32 %v9533_v1, %v9534_v13 }
 0xda2   :  { %v9536_v15 = vand.u32 4294901760, %v9535_v14 }
 0xda4   :  { %12260 = vmatmul.mubr.f32.vlgmr.msra.gmra.mrb[8].mxu0 %v9536_v15 }
 0xda5   :  { %12263 = vmatpush3.msra.mxu0 %v9547_v9  ;;  %12264 = vmatprep.mubr.f32.mxu0 %v9522_v0  ;;  %v55_v9 = vld [vmem:[#allocation5 + $0x68] sm:$0xff] }
 0xda6   :  { %12267 = vmatprep.subr.mxu0 %v9544_v6 }
 0xdac   :  { %12265 = vmatmul.mubr.f32.vlgmr.msra.gmra.mrb[8].mxu0 %v9532_v12 }
 0xdad   :  { %12268 = vmatpush3.msra.mxu0 %v9544_v6  ;;  %12269 = vmatprep.mubr.f32.mxu0 %v9523_v2  ;;  %v13655_v6 = vpack.c.bf16 %v10117_v59, %v10110_v58 }
 0xdae   :  { %12272 = vmatprep.subr.mxu0 %v9457_v60 }
 0xdb4   :  { %12270 = vmatmul.mubr.f32.vlgmr.msra.gmra.mrb[8].mxu0 %v9533_v1 }
 0xdb5   :  { %12273 = vmatpush3.msra.mxu0 %v9457_v60  ;;  %12274 = vmatprep.mubr.f32.mxu0 %v9524_v3  ;;  %v13649_v3 = vpack.c.bf16 %v10102_v48, %v10095_v47 }
 0xdb6   :  { %12277 = vmatprep.subr.mxu0 %v9545_v7 }
 0xdbc   :  { %12275 = vmatmul.mubr.f32.vlgmr.msra.gmra.mrb[8].mxu0 %v9534_v13 }
 0xdbd   :  { %12278 = vmatpush3.msra.mxu0 %v9545_v7  ;;  %12279 = vmatprep.mubr.f32.mxu0 %v9522_v0  ;;  %v53_v7 = vld [vmem:[#allocation5 + $0x48] sm:$0xff] }
 0xdbe   :  { %12282 = vmatprep.subr.mxu0 %v9457_v60 }
 0xdc4   :  { %12280 = vmatmul.mubr.f32.vlgmr.msra.gmra.mrb[8].mxu0 %v9532_v12 }
 0xdc5   :  { %12283 = vmatpush3.msra.mxu0 %v9457_v60  ;;  %12284 = vmatprep.mubr.f32.mxu0 %v9522_v0  ;;  %v13644_v60 = vpack.c.bf16 %v10105_v57, %v10098_v56  ;;  %v10119_v0 = vand.u32 4294901760, %v10118_v62 }
 0xdc7   :  { %12524 = vmatprep.subr.bf16.mxu1 %v13644_v60  ;;  %v13647_v2 = vpack.c.bf16 %v10119_v0, %v10112_v63 }
 0xdcc   :  { %12285 = vmatmul.mubr.f32.vlgmr.msra.gmra.mrb[8].mxu0 %v9532_v12 }
 0xe9f   :  { %v12286_v17 = vpop.f32.mrb[8].mxu0 }
 0xea0   :  { %v9952_v18 = vadd.f32 %v12286_v17, %v11218_v16  ;;  %v9935_v19 = vpop.f32.mrb[9].mxu0 }
 0xea1   :  { %v9951_v20 = vadd.f32 %v11218_v16, %v9935_v19 }
 0xea2   :  { %v9954_v22 = vadd.f32 %v12965_v21, %v9952_v18 }
 0xea3   :  { %v9953_v24 = vadd.f32 %v12966_v23, %v9951_v20 }
 0xea4   :  { %v9958_v25 = vsel %vm69_vm0, %v9954_v22, 0.0 }
 0xea5   :  { %9959 = vadd.xlane.f32.xlu0 %v9958_v25  ;;  %v9955_v26 = vsel %vm69_vm0, %v9953_v24, 0.0 }
 0xea6   :  { %9956 = vadd.xlane.f32.xlu1 %v9955_v26 }
 0xf32   :  { %v9960_v27 = vpop.xlane.xlu0 %9959 }
 0xf33   :  { %v9963_v37 = vmul.f32 0.03125, %v9960_v27  ;;  %v9957_v29 = vpop.xlane.xlu1 %9956 }
 0xf34   :  { %v9962_v30 = vmul.f32 0.03125, %v9957_v29 }
 0xf35   :  { %v13622_v31 = vsub.f32 %v9954_v22, %v9963_v37 }
 0xf36   :  { %v13624_v32 = vsub.f32 %v9953_v24, %v9962_v30  ;;  %v11219_v30 = vld [vmem:[%s13801_s2 + $0x4] ss:$0 sm:$0xff] }
 0xf37   :  { %v9967_v33 = vmul.f32 %v13622_v31, %v13622_v31 }
 0xf38   :  { %v9966_v34 = vmul.f32 %v13624_v32, %v13624_v32 }
 0xf39   :  { %v9971_v35 = vsel %vm69_vm0, %v9967_v33, 0.0 }
 0xf3a   :  { %9972 = vadd.xlane.f32.xlu1 %v9971_v35  ;;  %v9968_v50 = vsel %vm69_vm0, %v9966_v34, 0.0 }
 0xf3b   :  { %9969 = vadd.xlane.f32.xlu0 %v9968_v50  ;;  %v11220_v50 = vld [vmem:[%s13801_s2 + $0x5] ss:$0 sm:$0xff] }
 0xf4b   :  { %10548 = vrot.lane.b32.xlu1 %v50_v38, %s13048_s14 }
 0xf4f   :  { %10550 = vrot.lane.b32.xlu1 %v51_v39, %s13048_s14 }
 0xf51   :  { %10546 = vrot.lane.b32.xlu0 %v49_v36, %s13048_s14 }
 0xf53   :  { %10554 = vrot.lane.b32.xlu1 %v53_v7, %s13048_s14 }
 0xf55   :  { %10552 = vrot.lane.b32.xlu0 %v52_v42, %s13048_s14 }
 0xf57   :  { %10558 = vrot.lane.b32.xlu1 %v55_v9, %s13048_s14 }
 0xf59   :  { %10556 = vrot.lane.b32.xlu0 %v54_v8, %s13048_s14 }
 0xf5d   :  { %10560 = vrot.lane.b32.xlu0 %v56_v10, %s13048_s14  ;;  %s13011_s14 = scalar_lea.vmem %s11205_s13, 256 }
 0xf5e   :  { %p13012_p2 = scmp.ne.s32.totalorder %s11205_s13, %s13011_s14  ;;  %p13017_p4 = scmp.lt.s32.totalorder %s13011_s14, %s13011_s14 }
 0xf60   :  { %p13018_p5 = por %p13017_p4, %p13016_p3 }
 0xf62   :  { %p13019_p6 = pnand %p13018_p5, %p13012_p2 }
 0xfc7   :  { %v9973_v46 = vpop.xlane.xlu1 %9972 }
 0xfc8   :  { %v9975_v11 = vmul.f32 0.03125, %v9973_v46  ;;  %v9970_v12 = vpop.xlane.xlu0 %9969 }
 0xfc9   :  { %v9974_v1 = vmul.f32 0.03125, %v9970_v12 }
 0xfca   :  { %v9977_v13 = vadd.f32 1e-05, %v9975_v11 }
 0xfcb   :  { %v9976_v14 = vadd.f32 1e-05, %v9974_v1  ;;  %v10549_v16 = vpop.permute.xlu1 %10548 }
 0xfcc   :  { %12954 = vrsqrt.f32 %v9977_v13  ;;  %v10547_v15 = vpop.permute.xlu0 %10546  ;;  %v10581_v18 = vand.u32 4294901760, %v10549_v16 }
 0xfcd   :  { %12956 = vrsqrt.f32 %v9976_v14  ;;  %v10578_v17 = vand.u32 4294901760, %v10547_v15 }
 0xfce   :  { %v13665_v21 = vsub.f32 %v10549_v16, %v10581_v18 }
 0xfcf   :  { %v13661_v19 = vsub.f32 %v10547_v15, %v10578_v17  ;;  %v13663_v20 = vpack.c.bf16 %v10581_v18, %v10578_v17  ;;  %v10551_v22 = vpop.permute.xlu1 %10550 }
 0xfd0   :  { %v10553_v23 = vpop.permute.xlu0 %10552  ;;  %v10584_v24 = vand.u32 4294901760, %v10551_v22 }
 0xfd1   :  { %12612 = vmatprep.subr.bf16.mxu0 %v13663_v20  ;;  %v10587_v25 = vand.u32 4294901760, %v10553_v23  ;;  %v10673_v62 = vand.u32 4294901760, %v13661_v19 }
 0xfd2   :  { %12614 = vmatpush3.bf16.msra.mxu0 %v13663_v20  ;;  %v13669_v26 = vsub.f32 %v10551_v22, %v10584_v24 }
 0xfd3   :  { %v13671_v27 = vsub.f32 %v10553_v23, %v10587_v25  ;;  %v13673_v37 = vpack.c.bf16 %v10587_v25, %v10584_v24  ;;  %v10555_v55 = vpop.permute.xlu1 %10554  ;;  %v10674_v0 = vsub.f32 %v13661_v19, %v10673_v62 }
 0xfd4   :  { %v10557_v54 = vpop.permute.xlu0 %10556  ;;  %v10590_v57 = vand.u32 4294901760, %v10555_v55  ;;  %v10687_v9 = vand.u32 4294901760, %v13669_v26 }
 0xfd5   :  { %12616 = vmatprep.subr.bf16.mxu0 %v13673_v37  ;;  %v10593_v56 = vand.u32 4294901760, %v10557_v54  ;;  %v10675_v7 = vand.u32 4294901760, %v10674_v0  ;;  %v10694_v10 = vand.u32 4294901760, %v13671_v27  ;;  %v13742_v1 = vpack.c.bf16 %v13671_v27, %v13669_v26 }
 0xfd6   :  { %v12955_v29 = vpop.eup %12954  ;;  %12618 = vmatpush3.bf16.msra.mxu0 %v13673_v37  ;;  %v10688_v11 = vsub.f32 %v13669_v26, %v10687_v9 }
 0xfd7   :  { %v12957_v33 = vpop.eup %12956  ;;  %v9981_v34 = vmul.f32 %v12955_v29, %v13622_v31  ;;  %v13709_v58 = vpack.c.bf16 %v10593_v56, %v10590_v57  ;;  %v10559_v59 = vpop.permute.xlu1 %10558  ;;  %v10695_v12 = vsub.f32 %v13671_v27, %v10694_v10  ;;  %v12631_v13 = vpack.c.bf16 %v10694_v10, %v10687_v9 }
 0xfd8   :  { %v9980_v35 = vmul.f32 %v12957_v33, %v13624_v32  ;;  %v10596_v61 = vand.u32 4294901760, %v10559_v59  ;;  %v10689_v14 = vand.u32 4294901760, %v10688_v11 }
 0xfd9   :  { %v9987_v36 = vmul.f32 %v11219_v30, %v9981_v34  ;;  %12620 = vmatprep.subr.bf16.mxu0 %v13709_v58  ;;  %v10696_v17 = vand.u32 4294901760, %v10695_v12 }
 0xfda   :  { %v9986_v38 = vmul.f32 %v11219_v30, %v9980_v35  ;;  %12622 = vmatpush3.bf16.msra.mxu0 %v13709_v58 }
 0xfdb   :  { %v13685_v39 = vadd.f32 %v11220_v50, %v9987_v36 }
 0xfdc   :  { %v13687_v40 = vadd.f32 %v11220_v50, %v9986_v38 }
 0xfdd   :  { %v10002_v41 = vsel %vm69_vm0, %v13685_v39, 0 }
 0xfde   :  { %v9999_v31 = vsel %vm69_vm0, %v13687_v40, 0  ;;  %v10083_v42 = vand.u32 4294901760, %v10002_v41 }
 0xfdf   :  { %v10073_v43 = vand.u32 4294901760, %v9999_v31 }
 0xfe0   :  { %v10084_v28 = vsub.f32 %v10002_v41, %v10083_v42 }
 0xfe1   :  { %v10074_v32 = vsub.f32 %v9999_v31, %v10073_v43 }
 0xfe2   :  { %v10085_v47 = vand.u32 4294901760, %v10084_v28 }
 0xfe3   :  { %v10075_v48 = vand.u32 4294901760, %v10074_v32 }
 0xfe4   :  { %v10086_v49 = vsub.f32 %v10084_v28, %v10085_v47 }
 0xfe5   :  { %v10076_v52 = vsub.f32 %v10074_v32, %v10075_v48 }
 0xfe6   :  { %v10087_v53 = vand.u32 4294901760, %v10086_v49 }
 0xfe7   :  { %v10077_v51 = vand.u32 4294901760, %v10076_v52 }
 0xfe9   :  { %12295 = vmatprep.mubr.f32.mxu1 %v10077_v51 }
 0xfea   :  { %12296 = vmatmul.mubr.f32.vlgmr.msra.gmra.mrb[20].mxu1 %v10087_v53 }
 0xfeb   :  { %12526 = vmatpush3.bf16.msra.mxu1 %v13644_v60  ;;  %12306 = vmatprep.mubr.f32.mxu1 %v10073_v43 }
 0xfec   :  { %12528 = vmatprep.subr.bf16.mxu1 %v13647_v2 }
 0xfef   :  { %12530 = vmatpush3.bf16.msra.mxu1 %v13647_v2 }
 0xff0   :  { %12532 = vmatprep.subr.bf16.mxu1 %v13649_v3 }
 0xff2   :  { %12307 = vmatmul.mubr.f32.vlgmr.msra.gmra.mrb[20].mxu1 %v10083_v42 }
 0xff3   :  { %12534 = vmatpush3.bf16.msra.mxu1 %v13649_v3  ;;  %12317 = vmatprep.mubr.f32.mxu1 %v10074_v32  ;;  %v10707_v3 = vsub.f32 %v10557_v54, %v10593_v56 }
 0xff4   :  { %12536 = vmatprep.subr.bf16.mxu1 %v13651_v4 }
 0xff5   :  { %v10708_v16 = vand.u32 4294901760, %v10707_v3 }
 0xff7   :  { %12538 = vmatpush3.bf16.msra.mxu1 %v13651_v4  ;;  %v10700_v4 = vsub.f32 %v10555_v55, %v10590_v57  ;;  %v10709_v23 = vsub.f32 %v10707_v3, %v10708_v16 }
 0xff8   :  { %12540 = vmatprep.subr.bf16.mxu1 %v13634_v44 }
 0xff9   :  { %v10701_v15 = vand.u32 4294901760, %v10700_v4  ;;  %v13744_v24 = vpack.c.bf16 %v10707_v3, %v10700_v4  ;;  %v10710_v30 = vand.u32 4294901760, %v10709_v23  ;;  %v11223_v23 = vld [vmem:[%s13801_s2 + $0x6] ss:$0 sm:$0xff] }
 0xffa   :  { %12318 = vmatmul.mubr.f32.vlgmr.msra.gmra.mrb[20].mxu1 %v10084_v28 }
 0xffb   :  { %12542 = vmatpush3.bf16.msra.mxu1 %v13634_v44  ;;  %12328 = vmatprep.mubr.f32.mxu1 %v10075_v48  ;;  %v10702_v22 = vsub.f32 %v10700_v4, %v10701_v15  ;;  %v12635_v25 = vpack.c.bf16 %v10708_v16, %v10701_v15 }
 0xffc   :  { %12544 = vmatprep.subr.bf16.mxu1 %v13636_v45 }
 0xffd   :  { %v10703_v29 = vand.u32 4294901760, %v10702_v22 }
 0xfff   :  { %12546 = vmatpush3.bf16.msra.mxu1 %v13636_v45  ;;  %v12587_v26 = vpack.c.bf16 %v10710_v30, %v10703_v29  ;;  %v11224_v30 = vld [vmem:[%s13801_s2 + $0x7] ss:$0 sm:$0xff] }
0x1000   :  { %12548 = vmatprep.subr.bf16.mxu1 %v13653_v5 }
0x1002   :  { %12329 = vmatmul.mubr.f32.vlgmr.msra.gmra.mrb[20].mxu1 %v10085_v47 }
0x1003   :  { %12550 = vmatpush3.bf16.msra.mxu1 %v13653_v5  ;;  %12339 = vmatprep.mubr.f32.mxu1 %v10073_v43  ;;  %v13730_v5 = vpack.c.bf16 %v13665_v21, %v13661_v19  ;;  %v10714_v19 = vsub.f32 %v10559_v59, %v10596_v61 }
0x1004   :  { %12552 = vmatprep.subr.bf16.mxu1 %v13655_v6 }
0x1005   :  { %v10715_v33 = vand.u32 4294901760, %v10714_v19 }
0x1007   :  { %12554 = vmatpush3.bf16.msra.mxu1 %v13655_v6  ;;  %v10716_v27 = vsub.f32 %v10714_v19, %v10715_v33 }
0x1008   :  { %12556 = vmatprep.subr.bf16.mxu1 %v13634_v44 }
0x1009   :  { %v10717_v38 = vand.u32 4294901760, %v10716_v27 }
0x100a   :  { %12340 = vmatmul.mubr.f32.vlgmr.msra.gmra.mrb[20].mxu1 %v10083_v42 }
0x100b   :  { %12558 = vmatpush3.bf16.msra.mxu1 %v13634_v44  ;;  %12350 = vmatprep.mubr.f32.mxu1 %v10073_v43  ;;  %v10561_v44 = vpop.permute.xlu0 %10560 }
0x100c   :  { %12560 = vmatprep.subr.bf16.mxu1 %v13636_v45  ;;  %v10599_v60 = vand.u32 4294901760, %v10561_v44 }
0x100e   :  { %v13724_v63 = vpack.c.bf16 %v10599_v60, %v10596_v61  ;;  %v10721_v18 = vsub.f32 %v10561_v44, %v10599_v60 }
0x100f   :  { %12562 = vmatpush3.bf16.msra.mxu1 %v13636_v45  ;;  %v10680_v45 = vand.u32 4294901760, %v13665_v21 }
0x1010   :  { %12564 = vmatprep.subr.bf16.mxu1 %v13663_v20  ;;  %12624 = vmatprep.subr.bf16.mxu0 %v13724_v63  ;;  %v10722_v34 = vand.u32 4294901760, %v10721_v18  ;;  %v13746_v50 = vpack.c.bf16 %v10721_v18, %v10714_v19 }
0x1011   :  { %v10681_v2 = vsub.f32 %v13665_v21, %v10680_v45  ;;  %v12627_v6 = vpack.c.bf16 %v10680_v45, %v10673_v62  ;;  %12626 = vmatpush3.bf16.msra.mxu0 %v13724_v63  ;;  %v12583_v21 = vpack.c.bf16 %v10696_v17, %v10689_v14 }
0x1012   :  { %12351 = vmatmul.mubr.f32.vlgmr.msra.gmra.mrb[20].mxu1 %v10083_v42  ;;  %v10723_v35 = vsub.f32 %v10721_v18, %v10722_v34  ;;  %v12639_v36 = vpack.c.bf16 %v10722_v34, %v10715_v33  ;;  %v11221_v42 = vld [vmem:[%s13801_s2 + $0x2] ss:$0 sm:$0xff] }
0x1013   :  { %12566 = vmatpush3.bf16.msra.mxu1 %v13663_v20  ;;  %v10682_v8 = vand.u32 4294901760, %v10681_v2  ;;  %12628 = vmatprep.subr.bf16.mxu0 %v12627_v6 }
0x1014   :  { %12568 = vmatprep.subr.bf16.mxu1 %v13673_v37  ;;  %v10724_v41 = vand.u32 4294901760, %v10723_v35 }
0x1015   :  { %v12579_v46 = vpack.c.bf16 %v10682_v8, %v10675_v7 }
0x1016   :  { %v12591_v31 = vpack.c.bf16 %v10724_v41, %v10717_v38 }
0x1017   :  { %12570 = vmatpush3.bf16.msra.mxu1 %v13673_v37 }
0x1018   :  { %12572 = vmatprep.subr.bf16.mxu1 %v13709_v58 }
0x101b   :  { %12574 = vmatpush3.bf16.msra.mxu1 %v13709_v58 }
0x101c   :  { %12576 = vmatprep.subr.bf16.mxu1 %v13724_v63 }
0x101f   :  { %12578 = vmatpush3.bf16.msra.mxu1 %v13724_v63 }
0x1020   :  { %12580 = vmatprep.subr.bf16.mxu1 %v12579_v46 }
0x10e5   :  { %v12352_v43 = vpop.f32.mrb[20].mxu1 }
0x10e6   :  { %v12661_v28 = vadd.f32 %v12352_v43, %v11221_v42  ;;  %v10522_v32 = vpop.f32.mrb[21].mxu1 }
0x10e7   :  { %v12662_v47 = vadd.f32 %v11221_v42, %v10522_v32 }
0x10e8   :  { %v10533_v48 = vmax.f32 %v12661_v28, 0.0 }
0x10e9   :  { %v10532_v49 = vmax.f32 %v12662_v47, 0.0 }
0x10ea   :  { %v10575_v52 = vsel %vm10570_vm3, %v10533_v48, 0 }
0x10eb   :  { %v10660_v51 = vand.u32 4294901760, %v10575_v52  ;;  %v10572_v53 = vsel %vm10570_vm3, %v10532_v49, 0 }
0x10ec   :  { %v10650_v54 = vand.u32 4294901760, %v10572_v53 }
0x10ed   :  { %v10661_v55 = vsub.f32 %v10575_v52, %v10660_v51 }
0x10ee   :  { %v10651_v56 = vsub.f32 %v10572_v53, %v10650_v54 }
0x10ef   :  { %v10662_v57 = vand.u32 4294901760, %v10661_v55 }
0x10f0   :  { %v10652_v44 = vand.u32 4294901760, %v10651_v56 }
0x10f1   :  { %v10663_v59 = vsub.f32 %v10661_v55, %v10662_v57 }
0x10f2   :  { %12426 = vmatprep.mubr.f32.mxu0 %v10652_v44  ;;  %v10653_v60 = vsub.f32 %v10651_v56, %v10652_v44 }
0x10f3   :  { %12427 = vmatmul.mubr.f32.vlgmr.msra.gmra.mrb[16].mxu0 %v10662_v57  ;;  %v10664_v62 = vand.u32 4294901760, %v10663_v59 }
0x10f4   :  { %12630 = vmatpush3.bf16.msra.mxu0 %v12627_v6  ;;  %12445 = vmatprep.mubr.f32.mxu0 %v10650_v54  ;;  %v10654_v61 = vand.u32 4294901760, %v10653_v60 }
0x10f5   :  { %12632 = vmatprep.subr.bf16.mxu0 %v12631_v13 }
0x10f6   :  { %12369 = vmatprep.mubr.f32.mxu1 %v10654_v61 }
0x10f7   :  { %12370 = vmatmul.mubr.f32.vlgmr.msra.gmra.mrb[22].mxu1 %v10664_v62 }
0x10f8   :  { %12582 = vmatpush3.bf16.msra.mxu1 %v12579_v46  ;;  %12634 = vmatpush3.bf16.msra.mxu0 %v12631_v13 }
0x10f9   :  { %12584 = vmatprep.subr.bf16.mxu1 %v12583_v21  ;;  %12388 = vmatprep.mubr.f32.mxu1 %v10650_v54 }
0x10fa   :  { %12636 = vmatprep.subr.bf16.mxu0 %v12635_v25 }
0x10fc   :  { %12586 = vmatpush3.bf16.msra.mxu1 %v12583_v21  ;;  %12638 = vmatpush3.bf16.msra.mxu0 %v12635_v25 }
0x10fd   :  { %12588 = vmatprep.subr.bf16.mxu1 %v12587_v26  ;;  %12640 = vmatprep.subr.bf16.mxu0 %v12639_v36 }
0x1100   :  { %12590 = vmatpush3.bf16.msra.mxu1 %v12587_v26  ;;  %12642 = vmatpush3.bf16.msra.mxu0 %v12639_v36 }
0x1101   :  { %12592 = vmatprep.subr.bf16.mxu1 %v12591_v31  ;;  %12644 = vmatprep.subr.bf16.mxu0 %v13663_v20 }
0x1103   :  { %12446 = vmatmul.mubr.f32.vlgmr.msra.gmra.mrb[16].mxu0 %v10660_v51 }
0x1104   :  { %12594 = vmatpush3.bf16.msra.mxu1 %v12591_v31  ;;  %12646 = vmatpush3.bf16.msra.mxu0 %v13663_v20 }
0x1105   :  { %12464 = vmatprep.mubr.f32.mxu0 %v10650_v54  ;;  %12596 = vmatprep.subr.bf16.mxu1 %v13730_v5 }
0x1106   :  { %12648 = vmatprep.subr.bf16.mxu0 %v13673_v37 }
0x1107   :  { %12389 = vmatmul.mubr.f32.vlgmr.msra.gmra.mrb[22].mxu1 %v10660_v51 }
0x1108   :  { %12598 = vmatpush3.bf16.msra.mxu1 %v13730_v5  ;;  %12407 = vmatprep.mubr.f32.mxu1 %v10651_v56 }
0x1109   :  { %12650 = vmatpush3.bf16.msra.mxu0 %v13673_v37  ;;  %12600 = vmatprep.subr.bf16.mxu1 %v13742_v1 }
0x110a   :  { %12652 = vmatprep.subr.bf16.mxu0 %v13709_v58 }
0x110c   :  { %12602 = vmatpush3.bf16.msra.mxu1 %v13742_v1 }
0x110d   :  { %12654 = vmatpush3.bf16.msra.mxu0 %v13709_v58  ;;  %12604 = vmatprep.subr.bf16.mxu1 %v13744_v24  ;;  %v11222_v58 = vld [vmem:[%s13801_s2 + $0x3] ss:$0 sm:$0xff] }
0x110e   :  { %12656 = vmatprep.subr.bf16.mxu0 %v13724_v63 }
0x1110   :  { %12606 = vmatpush3.bf16.msra.mxu1 %v13744_v24 }
0x1111   :  { %12658 = vmatpush3.bf16.msra.mxu0 %v13724_v63  ;;  %12608 = vmatprep.subr.bf16.mxu1 %v13746_v50 }
0x1114   :  { %12465 = vmatmul.mubr.f32.vlgmr.msra.gmra.mrb[16].mxu0 %v10660_v51  ;;  %12610 = vmatpush3.bf16.msra.mxu1 %v13746_v50 }
0x1117   :  { %12408 = vmatmul.mubr.f32.vlgmr.msra.gmra.mrb[22].mxu1 %v10661_v55 }
0x11e7   :  { %v12466_v20 = vpop.f32.mrb[16].mxu0 }
0x11e8   :  { %v11147_v37 = vpop.f32.mrb[17].mxu0 }
0x11ea   :  { %v12409_v45 = vpop.f32.mrb[22].mxu1 }
0x11eb   :  { %v12663_v0 = vadd.f32 %v12409_v45, %v11222_v58  ;;  %v10871_v2 = vpop.f32.mrb[23].mxu1 }
0x11ec   :  { %v12665_v3 = vadd.f32 %v11222_v58, %v10871_v2 }
0x11ed   :  { %v12664_v4 = vadd.f32 %v12663_v0, %v12466_v20 }
0x11ee   :  { %v12666_v5 = vadd.f32 %v12665_v3, %v11147_v37 }
0x11ef   :  { %v11158_v63 = vadd.f32 %v12664_v4, %v13685_v39 }
0x11f0   :  { %v11157_v6 = vadd.f32 %v12666_v5, %v13687_v40 }
0x11f1   :  { %v11162_v7 = vsel %vm69_vm0, %v11158_v63, 0.0 }
0x11f2   :  { %11163 = vadd.xlane.f32.xlu0 %v11162_v7  ;;  %v11159_v8 = vsel %vm69_vm0, %v11157_v6, 0.0 }
0x11f3   :  { %11160 = vadd.xlane.f32.xlu1 %v11159_v8 }
0x127f   :  { %v11164_v9 = vpop.xlane.xlu0 %11163 }
0x1280   :  { %v11166_v10 = vmul.f32 0.03125, %v11164_v9  ;;  %v11161_v46 = vpop.xlane.xlu1 %11160 }
0x1281   :  { %v11165_v11 = vmul.f32 0.03125, %v11161_v46 }
0x1282   :  { %v11168_v12 = vsub.f32 %v11158_v63, %v11166_v10 }
0x1283   :  { %v11167_v1 = vsub.f32 %v11157_v6, %v11165_v11 }
0x1284   :  { %v11170_v13 = vmul.f32 %v11168_v12, %v11168_v12 }
0x1285   :  { %v11169_v14 = vmul.f32 %v11167_v1, %v11167_v1 }
0x1286   :  { %v11174_v15 = vsel %vm69_vm0, %v11170_v13, 0.0 }
0x1287   :  { %11175 = vadd.xlane.f32.xlu1 %v11174_v15  ;;  %v11171_v39 = vsel %vm69_vm0, %v11169_v14, 0.0 }
0x1288   :  { %11172 = vadd.xlane.f32.xlu0 %v11171_v39 }
0x1314   :  { %v11176_v40 = vpop.xlane.xlu1 %11175 }
0x1315   :  { %v11178_v16 = vmul.f32 0.03125, %v11176_v40  ;;  %v11173_v17 = vpop.xlane.xlu0 %11172 }
0x1316   :  { %v11177_v18 = vmul.f32 0.03125, %v11173_v17 }
0x1317   :  { %v11180_v19 = vadd.f32 1e-05, %v11178_v16 }
0x1318   :  { %v11179_v21 = vadd.f32 1e-05, %v11177_v18 }
0x1319   :  { %12958 = vrsqrt.f32 %v11180_v19 }
0x131a   :  { %12960 = vrsqrt.f32 %v11179_v21 }
0x1323   :  { %v12959_v22 = vpop.eup %12958 }
0x1324   :  { %v12961_v24 = vpop.eup %12960  ;;  %v11184_v25 = vmul.f32 %v12959_v22, %v11168_v12 }
0x1325   :  { %v11183_v29 = vmul.f32 %v12961_v24, %v11167_v1 }
0x1326   :  { %v11190_v33 = vmul.f32 %v11223_v23, %v11184_v25 }
0x1327   :  { %v11189_v34 = vmul.f32 %v11223_v23, %v11183_v29 }
0x1328   :  { %v11196_v26 = vadd.f32 %v11224_v30, %v11190_v33 }
0x1329   :  { %v11195_v27 = vadd.f32 %v11224_v30, %v11189_v34 }
0x132a   :  { %11198 = vst.msk [vmem:[#allocation7 + $0x8] sm:$0xff] %vm69_vm0, %v11196_v26 }
0x132b   :  { %11197 = vst.msk [vmem:[#allocation7] sm:$0xff] %vm69_vm0, %v11195_v27 }
0x132c   :  { %13022 = shalt.err (!%p13019_p6)
}
0x132d   :  { %s13023_s16 = scalar_lea.hbm %s13802_s3, 256 }
0x132e   :  { %p13024_p7 = scmp.ne.s32.totalorder %s13802_s3, %s13023_s16  ;;  %p13027_p8 = scmp.lt.u32.totalorder %s13023_s16, %s13802_s3 }
0x1330   :  { %p13029_p9 = pnand %p13027_p8, %p13024_p7 }
0x1332   :  { %13032 = shalt.err (!%p13029_p9)
}
0x1333   :  { %11210 = dma.vmem_to_hbm [thread:$0]  %s11205_s13, 256, %s13802_s3, [#allocation4], %s13040_s22, %s13040_s22, %s13041_s23  }
0x1334   :  { %13037 = dma.done.wait [#allocation4], 256  }
0x1335   :  { %13038 = vsyncadd [#allocation4], 4294967040 }
0x1336   :  { %11214 = vsyncpa [#allocation3], 1 }
0x1337   :  { %11215 = vsyncpa [#allocation6], 1 }
0x1338   :  { %11216 = vsyncpa [#allocation4], 1 }

</bundles_post_ra>
